<compile_context>
chip_gen: v6e
topology: v6e:2x2x1
jax: 0.10.0
libtpu: 0.0.40
codegen_flags: <defaults>
</compile_context>

<pallas_src>
import functools
import math

import jax
import jax.numpy as jnp
from jax import lax
from jax.experimental import pallas as pl
from jax.experimental.pallas import tpu as pltpu


def _round_up(x, m):
    return ((x + m - 1) // m) * m


def _pad_gate_cols(w, h, h_pad):
    """(rows, 3h) -> (rows, 3*h_pad): each gate gets its own 128-lane-aligned,
    zero-padded column block."""
    parts = [jnp.pad(w[:, g * h:(g + 1) * h], ((0, 0), (0, h_pad - h)))
             for g in range(3)]
    return jnp.concatenate(parts, axis=1)


def _vmem_capacity_bytes():
    try:
        return int(pltpu.get_tpu_info().vmem_capacity_bytes)
    except Exception:
        return 64 * 1024 * 1024    # conservative fallback (v7x per-TC VMEM)


# ----------------------------------------------------------------------------
# Pallas kernel: one grid step == one chunk of GRU timesteps for one batch block
# ----------------------------------------------------------------------------
def gru_fc_kernel(x_ref, wih_ref, whh_ref, bih_ref, bhh_ref, wfc_ref, bfc_ref,
                  out_ref, gi_ref, h_ref, *, t_chunk, b_block, h_pad, t_total,
                  unroll):
    """
    x_ref   : (t_chunk*b_block, E)  time-major flattened embeddings (chunk)
    wih_ref : (E, 3*h_pad)          W_ih^T, gate-padded      (whole, VMEM)
    whh_ref : (h_pad, 3*h_pad)      W_hh^T, gate-padded      (whole, VMEM)
    bih/bhh : (1, 3*h_pad)          gate-padded biases (f32) (whole, VMEM)
    wfc_ref : (h_pad, c_pad)        W_fc^T, padded           (whole, VMEM)
    bfc_ref : (1, c_pad)
    out_ref : (b_block, c_pad)      f32 logits, written on last chunk
    gi_ref  : VMEM (t_chunk*b_block, 3*h_pad) -- precomputed input projection
    h_ref   : VMEM (b_block, h_pad) f32 -- hidden carried across time chunks
    """
    c = pl.program_id(1)
    n_time = pl.num_programs(1)

    @pl.when(c == 0)
    def _init():
        h_ref[...] = jnp.zeros_like(h_ref)

    # Hoisted input projection for the whole chunk: one large matmul
    # (M = t_chunk * b_block rows) instead of T tiny per-step matmuls.
    # b_ih is folded in here, outside the recurrence.
    gi_ref[...] = (jnp.dot(x_ref[...], wih_ref[...],
                           preferred_element_type=jnp.float32)
                   + bih_ref[...]).astype(gi_ref.dtype)

    # Loop-invariant loads / broadcasts hoisted out of the recurrence.
    whh = whh_ref[...]
    bhh = jnp.broadcast_to(bhh_ref[...], (b_block, 3 * h_pad))

    def step(i, h):
        row = pl.multiple_of(i * b_block, b_block)          # sublane-aligned
        gi = gi_ref[pl.ds(row, b_block), :].astype(jnp.float32)
        # TODO(synk): hold W_hh in the MXU weight registers across the chunk
        # (pltpu.matmul_push_rhs / matmul_acc_lhs / matmul_pop) instead of a
        # per-step jnp.dot; with the partial unroll the compiler can already
        # hoist the weight load out of the unrolled body.
        gh = jnp.dot(h.astype(whh.dtype), whh,
                     preferred_element_type=jnp.float32) + bhh
        # Each gate occupies a full 128-lane block -> whole-vreg slices.
        r = jax.nn.sigmoid(gi[:, 0:h_pad] + gh[:, 0:h_pad])
        z = jax.nn.sigmoid(gi[:, h_pad:2 * h_pad] + gh[:, h_pad:2 * h_pad])
        n = jnp.tanh(gi[:, 2 * h_pad:3 * h_pad] + r * gh[:, 2 * h_pad:3 * h_pad])
        return (1.0 - z) * n + z * h

    def run(n_steps):
        def body():
            h_ref[...] = lax.fori_loop(0, n_steps, step, h_ref[...],
                                       unroll=min(unroll, n_steps))
        return body

    # Ragged tail: the last chunk simply runs fewer steps -- no per-step mask
    # on the recurrence critical path for the full chunks.
    t_rem = t_total % t_chunk
    if t_rem == 0:
        run(t_chunk)()
    else:
        pl.when(c != n_time - 1)(run(t_chunk))
        pl.when(c == n_time - 1)(run(t_rem))

    # Final FC once, at the last chunk.  Output last dim padded to 128 lanes
    # so the store is unmasked (lane-dense).
    @pl.when(c == n_time - 1)
    def _finalize():
        logits = jnp.dot(h_ref[...].astype(wfc_ref.dtype), wfc_ref[...],
                         preferred_element_type=jnp.float32) + bfc_ref[...]
        out_ref[...] = logits.astype(out_ref.dtype)


# ----------------------------------------------------------------------------
# Wrapper: padding / layout plumbing + pallas_call
# ----------------------------------------------------------------------------
def gru_fc_pallas(x_tm, w_ih_t, w_hh_t, b_ih, b_hh, w_fc_t, b_fc, *,
                  t_chunk=None, num_batch_blocks=None,
                  compute_dtype=jnp.float32, unroll=8):
    """x_tm: (T, B, E) time-major embeddings -> logits (B, C) float32."""
    T, B, E = x_tm.shape
    H = w_hh_t.shape[0]
    C = w_fc_t.shape[1]

    if num_batch_blocks is None:
        # Batch-parallel grid axis (v7x: 2 TensorCores) only when there is
        # enough batch to fill both cores' MXU M dimension.
        # TODO(synk): detect TensorCore count from pltpu.get_tpu_info() instead
        # of a size heuristic.
        num_batch_blocks = 2 if B >= 256 else 1
    n_bb = int(num_batch_blocks)

    b_pad = _round_up(max(B, 8), 8 * n_bb)     # >=8 sublanes per batch block
    b_block = b_pad // n_bb
    h_pad = _round_up(H, 128)                  # each gate in a 128-lane block
    c_pad = _round_up(C, 128)                  # lane-dense FC output
    e_pad = _round_up(E, 128)                  # for VMEM byte accounting only

    x_bytes = jnp.dtype(compute_dtype).itemsize
    gi_dtype = (jnp.float32 if jnp.dtype(compute_dtype) == jnp.dtype(jnp.float32)
                else compute_dtype)            # bf16 staged gates in bf16 mode
    gi_bytes = jnp.dtype(gi_dtype).itemsize

    # --- VMEM-budget-derived time chunk + explicit vmem limit ---------------
    cap = max(_vmem_capacity_bytes(), 32 * 1024 * 1024)
    budget = (cap * 2) // 5                    # ~40% of physical VMEM
    w_bytes = ((e_pad * 3 * h_pad + h_pad * 3 * h_pad + h_pad * c_pad) * x_bytes
               + (2 * 3 * h_pad + c_pad) * 4)  # single-buffered weights/biases
    fixed = (w_bytes + b_block * h_pad * 4     # h scratch
             + 2 * b_block * c_pad * 4         # double-buffered output
             + (2 << 20))                      # compiler-internal slack
    per_t = b_block * (2 * e_pad * x_bytes     # double-buffered x chunk
                       + 3 * h_pad * gi_bytes)  # gi scratch
    if t_chunk is None:
        t_chunk = max(1, min(T, (budget - fixed) // per_t))
    t_chunk = int(max(1, min(t_chunk, T)))
    n_chunks = (T + t_chunk - 1) // t_chunk
    t_padded = n_chunks * t_chunk
    rows = t_chunk * b_block

    footprint = fixed + t_chunk * per_t
    vmem_limit = int(min(cap - (4 << 20), max(32 << 20, 2 * footprint)))

    # --- weights / biases: gate-padded, pre-transposed, compute_dtype -------
    # bf16 operands (f32 MXU accumulate) recommended on v5e, v6e and v7x.
    wih_p = _pad_gate_cols(w_ih_t, H, h_pad).astype(compute_dtype)       # (E, 3Hp)
    whh_p = jnp.pad(_pad_gate_cols(w_hh_t, H, h_pad),
                    ((0, h_pad - H), (0, 0))).astype(compute_dtype)      # (Hp, 3Hp)
    bih_p = _pad_gate_cols(b_ih, H, h_pad).astype(jnp.float32)           # (1, 3Hp)
    bhh_p = _pad_gate_cols(b_hh, H, h_pad).astype(jnp.float32)           # (1, 3Hp)
    wfc_p = jnp.pad(w_fc_t, ((0, h_pad - H), (0, c_pad - C))).astype(compute_dtype)
    bfc_p = jnp.pad(b_fc, ((0, 0), (0, c_pad - C))).astype(jnp.float32)

    # --- activations: already time-major; pad, batch-block, flatten ---------
    x_p = jnp.pad(x_tm.astype(compute_dtype),
                  ((0, t_padded - T), (0, b_pad - B), (0, 0)))           # (Tp,Bp,E)
    x_p = x_p.reshape(t_padded, n_bb, b_block, E).transpose(1, 0, 2, 3)  # (nbb,Tp,bb,E)
    x_flat = x_p.reshape(n_bb * t_padded * b_block, E)

    # Loop-invariant inputs: whole-array, single-buffered VMEM residency.
    vmem_full = lambda: pl.BlockSpec(memory_space=pltpu.MemorySpace.VMEM)

    kernel = functools.partial(gru_fc_kernel, t_chunk=t_chunk, b_block=b_block,
                               h_pad=h_pad, t_total=T, unroll=unroll)

    out = pl.pallas_call(
        kernel,
        out_shape=jax.ShapeDtypeStruct((b_pad, c_pad), jnp.float32),
        grid_spec=pltpu.PrefetchScalarGridSpec(
            num_scalar_prefetch=0,
            grid=(n_bb, n_chunks),               # batch blocks x time chunks
            in_specs=[
                pl.BlockSpec((rows, E), lambda bi, c: (bi * n_chunks + c, 0)),
                vmem_full(),                     # W_ih
                vmem_full(),                     # W_hh
                vmem_full(),                     # b_ih
                vmem_full(),                     # b_hh
                vmem_full(),                     # W_fc
                vmem_full(),                     # b_fc
            ],
            out_specs=pl.BlockSpec((b_block, c_pad), lambda bi, c: (bi, 0)),
            scratch_shapes=[
                pltpu.VMEM((rows, 3 * h_pad), gi_dtype),   # gi for the chunk
                pltpu.VMEM((b_block, h_pad), jnp.float32),  # carried hidden h
            ]),
        compiler_params=pltpu.CompilerParams(
            dimension_semantics=("parallel", "arbitrary"),  # time sequential
            vmem_limit_bytes=vmem_limit),
    )(x_flat, wih_p, whh_p, bih_p, bhh_p, wfc_p, bfc_p)

    return out[:B, :C]


# ----------------------------------------------------------------------------
# IMDBModel forward (glue in plain JAX, recurrence + projections in Pallas)
# ----------------------------------------------------------------------------
def imdb_forward(tokens, params, *, compute_dtype=jnp.float32, t_chunk=None,
                 num_batch_blocks=None):
    # Embedding gather produced directly time-major and in compute_dtype so the
    # largest HBM stream is materialized once, in the cheapest dtype, with no
    # separate transpose pass.
    # TODO(synk): fuse the gather into the kernel (scalar-prefetch tokens into
    # SMEM, embedding table in HBM via memory_space=pl.ANY, per-chunk DMA row
    # gather -- or gather from a pre-projected table embed @ W_ih).
    emb = params["embed"].astype(compute_dtype)
    x_tm = jnp.take(emb, tokens.T, axis=0)                 # (T, B, E)
    return gru_fc_pallas(x_tm,
                         params["w_ih_t"], params["w_hh_t"],
                         params["b_ih"], params["b_hh"],
                         params["w_fc_t"], params["b_fc"],
                         compute_dtype=compute_dtype, t_chunk=t_chunk,
                         num_batch_blocks=num_batch_blocks)


# Pure-JAX reference (mirrors PyTorch nn.GRU + nn.Linear semantics).
def imdb_forward_ref(tokens, params):
    x_emb = jnp.take(params["embed"], tokens, axis=0)
    B, T, E = x_emb.shape
    H = params["w_hh_t"].shape[0]
    h = jnp.zeros((B, H), jnp.float32)
    for t in range(T):
        gi = x_emb[:, t, :] @ params["w_ih_t"] + params["b_ih"]
        gh = h @ params["w_hh_t"] + params["b_hh"]
        r = jax.nn.sigmoid(gi[:, :H] + gh[:, :H])
        z = jax.nn.sigmoid(gi[:, H:2 * H] + gh[:, H:2 * H])
        n = jnp.tanh(gi[:, 2 * H:] + r * gh[:, 2 * H:])
        h = (1.0 - z) * n + z * h
    return h @ params["w_fc_t"] + params["b_fc"]


def init_params(key, n_vocab, embed_dim, hidden_dim, num_classes):
    ks = jax.random.split(key, 7)
    bound = 1.0 / math.sqrt(hidden_dim)
    u = lambda k, shape, b: jax.random.uniform(k, shape, jnp.float32, -b, b)
    return {
        "embed":  jax.random.normal(ks[0], (n_vocab, embed_dim), jnp.float32),
        # stored pre-transposed: W_ih^T (E, 3H), W_hh^T (H, 3H), gate order r,z,n
        "w_ih_t": u(ks[1], (embed_dim, 3 * hidden_dim), bound),
        "w_hh_t": u(ks[2], (hidden_dim, 3 * hidden_dim), bound),
        "b_ih":   u(ks[3], (1, 3 * hidden_dim), bound),
        "b_hh":   u(ks[4], (1, 3 * hidden_dim), bound),
        "w_fc_t": u(ks[5], (hidden_dim, num_classes), bound),
        "b_fc":   u(ks[6], (1, num_classes), bound),
    }


if __name__ == "__main__":
    B, T = 2, 8
    n_vocab, embed_dim, hidden_dim, num_classes = 100, 128, 32, 2

    key = jax.random.PRNGKey(0)
    k_tok, k_par = jax.random.split(key)
    tokens = jax.random.randint(k_tok, (B, T), 0, n_vocab, dtype=jnp.int32)
    params = init_params(k_par, n_vocab, embed_dim, hidden_dim, num_classes)

    ref = imdb_forward_ref(tokens, params)

    # f32 matmul path: faithful to the PyTorch module's numerics.
    logits_f32 = jax.block_until_ready(
        imdb_forward(tokens, params, compute_dtype=jnp.float32))
    assert logits_f32.shape == (B, num_classes)
    assert jnp.allclose(logits_f32, ref, atol=1e-5, rtol=1e-5), (logits_f32, ref)

    # Exercise multi-chunk + ragged tail + 2 batch blocks (all kernel paths).
    logits_chunked = jax.block_until_ready(
        imdb_forward(tokens, params, compute_dtype=jnp.float32,
                     t_chunk=3, num_batch_blocks=2))
    assert jnp.allclose(logits_chunked, ref, atol=1e-5, rtol=1e-5), (
        logits_chunked, ref)

    # bf16 matmul-operand path (f32 MXU accumulate, f32 gate math; recommended
    # on v5e/v6e/v7x for HBM-bandwidth-bound workloads).
    logits_bf16 = jax.block_until_ready(
        imdb_forward(tokens, params, compute_dtype=jnp.bfloat16))
    assert logits_bf16.shape == (B, num_classes)
    assert jnp.allclose(logits_bf16, ref, atol=1e-1, rtol=1e-1), (logits_bf16, ref)

    print("KERNEL_OK")
</pallas_src>

<mosaic_0001>
module attributes {stable_mosaic.version = 11 : i64} {
  func.func @gru_fc_kernel(%arg0: i32, %arg1: i32, %arg2: memref<64x128xf32, #tpu.memory_space<vmem>>, %arg3: memref<128x384xf32, #tpu.memory_space<vmem>>, %arg4: memref<128x384xf32, #tpu.memory_space<vmem>>, %arg5: memref<1x384xf32, #tpu.memory_space<vmem>>, %arg6: memref<1x384xf32, #tpu.memory_space<vmem>>, %arg7: memref<128x128xf32, #tpu.memory_space<vmem>>, %arg8: memref<1x128xf32, #tpu.memory_space<vmem>>, %arg9: memref<8x128xf32, #tpu.memory_space<vmem>>, %arg10: memref<64x384xf32, #tpu.memory_space<vmem>>, %arg11: memref<8x128xf32, #tpu.memory_space<vmem>>) attributes {dimension_semantics = [#tpu.dimension_semantics<parallel>, #tpu.dimension_semantics<arbitrary>], iteration_bounds = array<i64: 1, 1>, scalar_prefetch = 0 : i64, scratch_operands = 2 : i64, tpu.core_type = #tpu.core_type<tc>, window_params = [{transform_indices = @transform_0, window_bounds = array<i64: 64, 128>}, {pipeline_mode = #tpu.pipeline_mode<synchronous>, transform_indices = @transform_1, window_bounds = array<i64: 128, 384>}, {pipeline_mode = #tpu.pipeline_mode<synchronous>, transform_indices = @transform_2, window_bounds = array<i64: 128, 384>}, {pipeline_mode = #tpu.pipeline_mode<synchronous>, transform_indices = @transform_3, window_bounds = array<i64: 1, 384>}, {pipeline_mode = #tpu.pipeline_mode<synchronous>, transform_indices = @transform_4, window_bounds = array<i64: 1, 384>}, {pipeline_mode = #tpu.pipeline_mode<synchronous>, transform_indices = @transform_5, window_bounds = array<i64: 128, 128>}, {pipeline_mode = #tpu.pipeline_mode<synchronous>, transform_indices = @transform_6, window_bounds = array<i64: 1, 128>}, {transform_indices = @transform_7, window_bounds = array<i64: 8, 128>}]} {
    %c0_i32 = arith.constant 0 : i32
    %0 = arith.cmpi eq, %arg1, %c0_i32 : i32
    %1 = arith.extui %0 : i1 to i32
    %c0_i32_0 = arith.constant 0 : i32
    %2 = arith.cmpi ne, %1, %c0_i32_0 : i32
    scf.if %2 {
      %cst_67 = arith.constant 0.000000e+00 : f32
      %275 = vector.broadcast %cst_67 : f32 to vector<8x128xf32>
      %c0_68 = arith.constant 0 : index
      %c0_69 = arith.constant 0 : index
      %276 = vector.load %arg11[%c0_68, %c0_69] : memref<8x128xf32, #tpu.memory_space<vmem>>, vector<8x128xf32>
      tpu.vector_store %arg11[%c0_68, %c0_69], %275 {strides = array<i32>} : memref<8x128xf32, #tpu.memory_space<vmem>>, vector<8x128xf32>,
    } else {
    }
    %c0 = arith.constant 0 : index
    %c0_1 = arith.constant 0 : index
    %3 = vector.load %arg2[%c0, %c0_1] : memref<64x128xf32, #tpu.memory_space<vmem>>, vector<64x128xf32>
    %c0_2 = arith.constant 0 : index
    %c0_3 = arith.constant 0 : index
    %4 = vector.load %arg3[%c0_2, %c0_3] : memref<128x384xf32, #tpu.memory_space<vmem>>, vector<128x384xf32>
    %cst = arith.constant dense<0.000000e+00> : vector<64x384xf32>
    %5 = tpu.matmul %3, %4, %cst {dimension_numbers = #tpu.dot_dimension_numbers<[1], [0], [0], [1], [0, 0, 1, 1], [], []>} : vector<64x128xf32>, vector<128x384xf32>, vector<64x384xf32> -> vector<64x384xf32>
    %c0_4 = arith.constant 0 : index
    %c0_5 = arith.constant 0 : index
    %6 = vector.load %arg5[%c0_4, %c0_5] : memref<1x384xf32, #tpu.memory_space<vmem>>, vector<1x384xf32>
    %7 = vector.broadcast %6 : vector<1x384xf32> to vector<64x384xf32>
    %8 = arith.addf %5, %7 : vector<64x384xf32>
    %c0_6 = arith.constant 0 : index
    %c0_7 = arith.constant 0 : index
    %9 = vector.load %arg10[%c0_6, %c0_7] : memref<64x384xf32, #tpu.memory_space<vmem>>, vector<64x384xf32>
    tpu.vector_store %arg10[%c0_6, %c0_7], %8 {strides = array<i32>} : memref<64x384xf32, #tpu.memory_space<vmem>>, vector<64x384xf32>,
    %c0_8 = arith.constant 0 : index
    %c0_9 = arith.constant 0 : index
    %10 = vector.load %arg4[%c0_8, %c0_9] : memref<128x384xf32, #tpu.memory_space<vmem>>, vector<128x384xf32>
    %c0_10 = arith.constant 0 : index
    %c0_11 = arith.constant 0 : index
    %11 = vector.load %arg6[%c0_10, %c0_11] : memref<1x384xf32, #tpu.memory_space<vmem>>, vector<1x384xf32>
    %12 = vector.shape_cast %11 : vector<1x384xf32> to vector<1x384xf32>
    %13 = vector.broadcast %12 : vector<1x384xf32> to vector<8x384xf32>
    %c0_12 = arith.constant 0 : index
    %c0_13 = arith.constant 0 : index
    %14 = vector.load %arg11[%c0_12, %c0_13] : memref<8x128xf32, #tpu.memory_space<vmem>>, vector<8x128xf32>
    %c0_i32_14 = arith.constant 0 : i32
    %c8_i32 = arith.constant 8 : i32
    %15 = arith.muli %c0_i32_14, %c8_i32 : i32
    %16 = tpu.assume_multiple %15, 8 : i32
    %17 = arith.index_cast %16 : i32 to index
    %c0_15 = arith.constant 0 : index
    %18 = vector.load %arg10[%17, %c0_15] : memref<64x384xf32, #tpu.memory_space<vmem>>, vector<8x384xf32>
    %cst_16 = arith.constant dense<0.000000e+00> : vector<8x384xf32>
    %19 = tpu.matmul %14, %10, %cst_16 {dimension_numbers = #tpu.dot_dimension_numbers<[1], [0], [0], [1], [0, 0, 1, 1], [], []>} : vector<8x128xf32>, vector<128x384xf32>, vector<8x384xf32> -> vector<8x384xf32>
    %20 = arith.addf %19, %13 : vector<8x384xf32>
    %21 = vector.extract_strided_slice %18 {offsets = [0, 0], sizes = [8, 128], strides = [1, 1]} : vector<8x384xf32> to vector<8x128xf32>
    %22 = vector.extract_strided_slice %20 {offsets = [0, 0], sizes = [8, 128], strides = [1, 1]} : vector<8x384xf32> to vector<8x128xf32>
    %23 = arith.addf %21, %22 : vector<8x128xf32>
    %24 = arith.negf %23 : vector<8x128xf32>
    %25 = math.exp %24 : vector<8x128xf32>
    %cst_17 = arith.constant 1.000000e+00 : f32
    %26 = vector.broadcast %cst_17 : f32 to vector<8x128xf32>
    %27 = arith.addf %26, %25 : vector<8x128xf32>
    %28 = arith.divf %26, %27 : vector<8x128xf32>
    %29 = vector.extract_strided_slice %18 {offsets = [0, 128], sizes = [8, 128], strides = [1, 1]} : vector<8x384xf32> to vector<8x128xf32>
    %30 = vector.extract_strided_slice %20 {offsets = [0, 128], sizes = [8, 128], strides = [1, 1]} : vector<8x384xf32> to vector<8x128xf32>
    %31 = arith.addf %29, %30 : vector<8x128xf32>
    %32 = arith.negf %31 : vector<8x128xf32>
    %33 = math.exp %32 : vector<8x128xf32>
    %cst_18 = arith.constant 1.000000e+00 : f32
    %34 = vector.broadcast %cst_18 : f32 to vector<8x128xf32>
    %35 = arith.addf %34, %33 : vector<8x128xf32>
    %36 = arith.divf %34, %35 : vector<8x128xf32>
    %37 = vector.extract_strided_slice %18 {offsets = [0, 256], sizes = [8, 128], strides = [1, 1]} : vector<8x384xf32> to vector<8x128xf32>
    %38 = vector.extract_strided_slice %20 {offsets = [0, 256], sizes = [8, 128], strides = [1, 1]} : vector<8x384xf32> to vector<8x128xf32>
    %39 = arith.mulf %28, %38 : vector<8x128xf32>
    %40 = arith.addf %37, %39 : vector<8x128xf32>
    %41 = math.tanh %40 : vector<8x128xf32>
    %cst_19 = arith.constant 1.000000e+00 : f32
    %42 = vector.broadcast %cst_19 : f32 to vector<8x128xf32>
    %43 = arith.subf %42, %36 : vector<8x128xf32>
    %44 = arith.mulf %43, %41 : vector<8x128xf32>
    %45 = arith.mulf %36, %14 : vector<8x128xf32>
    %46 = arith.addf %44, %45 : vector<8x128xf32>
    %c1_i32 = arith.constant 1 : i32
    %c8_i32_20 = arith.constant 8 : i32
    %47 = arith.muli %c1_i32, %c8_i32_20 : i32
    %48 = tpu.assume_multiple %47, 8 : i32
    %49 = arith.index_cast %48 : i32 to index
    %c0_21 = arith.constant 0 : index
    %50 = vector.load %arg10[%49, %c0_21] : memref<64x384xf32, #tpu.memory_space<vmem>>, vector<8x384xf32>
    %cst_22 = arith.constant dense<0.000000e+00> : vector<8x384xf32>
    %51 = tpu.matmul %46, %10, %cst_22 {dimension_numbers = #tpu.dot_dimension_numbers<[1], [0], [0], [1], [0, 0, 1, 1], [], []>} : vector<8x128xf32>, vector<128x384xf32>, vector<8x384xf32> -> vector<8x384xf32>
    %52 = arith.addf %51, %13 : vector<8x384xf32>
    %53 = vector.extract_strided_slice %50 {offsets = [0, 0], sizes = [8, 128], strides = [1, 1]} : vector<8x384xf32> to vector<8x128xf32>
    %54 = vector.extract_strided_slice %52 {offsets = [0, 0], sizes = [8, 128], strides = [1, 1]} : vector<8x384xf32> to vector<8x128xf32>
    %55 = arith.addf %53, %54 : vector<8x128xf32>
    %56 = arith.negf %55 : vector<8x128xf32>
    %57 = math.exp %56 : vector<8x128xf32>
    %cst_23 = arith.constant 1.000000e+00 : f32
    %58 = vector.broadcast %cst_23 : f32 to vector<8x128xf32>
    %59 = arith.addf %58, %57 : vector<8x128xf32>
    %60 = arith.divf %58, %59 : vector<8x128xf32>
    %61 = vector.extract_strided_slice %50 {offsets = [0, 128], sizes = [8, 128], strides = [1, 1]} : vector<8x384xf32> to vector<8x128xf32>
    %62 = vector.extract_strided_slice %52 {offsets = [0, 128], sizes = [8, 128], strides = [1, 1]} : vector<8x384xf32> to vector<8x128xf32>
    %63 = arith.addf %61, %62 : vector<8x128xf32>
    %64 = arith.negf %63 : vector<8x128xf32>
    %65 = math.exp %64 : vector<8x128xf32>
    %cst_24 = arith.constant 1.000000e+00 : f32
    %66 = vector.broadcast %cst_24 : f32 to vector<8x128xf32>
    %67 = arith.addf %66, %65 : vector<8x128xf32>
    %68 = arith.divf %66, %67 : vector<8x128xf32>
    %69 = vector.extract_strided_slice %50 {offsets = [0, 256], sizes = [8, 128], strides = [1, 1]} : vector<8x384xf32> to vector<8x128xf32>
    %70 = vector.extract_strided_slice %52 {offsets = [0, 256], sizes = [8, 128], strides = [1, 1]} : vector<8x384xf32> to vector<8x128xf32>
    %71 = arith.mulf %60, %70 : vector<8x128xf32>
    %72 = arith.addf %69, %71 : vector<8x128xf32>
    %73 = math.tanh %72 : vector<8x128xf32>
    %cst_25 = arith.constant 1.000000e+00 : f32
    %74 = vector.broadcast %cst_25 : f32 to vector<8x128xf32>
    %75 = arith.subf %74, %68 : vector<8x128xf32>
    %76 = arith.mulf %75, %73 : vector<8x128xf32>
    %77 = arith.mulf %68, %46 : vector<8x128xf32>
    %78 = arith.addf %76, %77 : vector<8x128xf32>
    %c2_i32 = arith.constant 2 : i32
    %c8_i32_26 = arith.constant 8 : i32
    %79 = arith.muli %c2_i32, %c8_i32_26 : i32
    %80 = tpu.assume_multiple %79, 8 : i32
    %81 = arith.index_cast %80 : i32 to index
    %c0_27 = arith.constant 0 : index
    %82 = vector.load %arg10[%81, %c0_27] : memref<64x384xf32, #tpu.memory_space<vmem>>, vector<8x384xf32>
    %cst_28 = arith.constant dense<0.000000e+00> : vector<8x384xf32>
    %83 = tpu.matmul %78, %10, %cst_28 {dimension_numbers = #tpu.dot_dimension_numbers<[1], [0], [0], [1], [0, 0, 1, 1], [], []>} : vector<8x128xf32>, vector<128x384xf32>, vector<8x384xf32> -> vector<8x384xf32>
    %84 = arith.addf %83, %13 : vector<8x384xf32>
    %85 = vector.extract_strided_slice %82 {offsets = [0, 0], sizes = [8, 128], strides = [1, 1]} : vector<8x384xf32> to vector<8x128xf32>
    %86 = vector.extract_strided_slice %84 {offsets = [0, 0], sizes = [8, 128], strides = [1, 1]} : vector<8x384xf32> to vector<8x128xf32>
    %87 = arith.addf %85, %86 : vector<8x128xf32>
    %88 = arith.negf %87 : vector<8x128xf32>
    %89 = math.exp %88 : vector<8x128xf32>
    %cst_29 = arith.constant 1.000000e+00 : f32
    %90 = vector.broadcast %cst_29 : f32 to vector<8x128xf32>
    %91 = arith.addf %90, %89 : vector<8x128xf32>
    %92 = arith.divf %90, %91 : vector<8x128xf32>
    %93 = vector.extract_strided_slice %82 {offsets = [0, 128], sizes = [8, 128], strides = [1, 1]} : vector<8x384xf32> to vector<8x128xf32>
    %94 = vector.extract_strided_slice %84 {offsets = [0, 128], sizes = [8, 128], strides = [1, 1]} : vector<8x384xf32> to vector<8x128xf32>
    %95 = arith.addf %93, %94 : vector<8x128xf32>
    %96 = arith.negf %95 : vector<8x128xf32>
    %97 = math.exp %96 : vector<8x128xf32>
    %cst_30 = arith.constant 1.000000e+00 : f32
    %98 = vector.broadcast %cst_30 : f32 to vector<8x128xf32>
    %99 = arith.addf %98, %97 : vector<8x128xf32>
    %100 = arith.divf %98, %99 : vector<8x128xf32>
    %101 = vector.extract_strided_slice %82 {offsets = [0, 256], sizes = [8, 128], strides = [1, 1]} : vector<8x384xf32> to vector<8x128xf32>
    %102 = vector.extract_strided_slice %84 {offsets = [0, 256], sizes = [8, 128], strides = [1, 1]} : vector<8x384xf32> to vector<8x128xf32>
    %103 = arith.mulf %92, %102 : vector<8x128xf32>
    %104 = arith.addf %101, %103 : vector<8x128xf32>
    %105 = math.tanh %104 : vector<8x128xf32>
    %cst_31 = arith.constant 1.000000e+00 : f32
    %106 = vector.broadcast %cst_31 : f32 to vector<8x128xf32>
    %107 = arith.subf %106, %100 : vector<8x128xf32>
    %108 = arith.mulf %107, %105 : vector<8x128xf32>
    %109 = arith.mulf %100, %78 : vector<8x128xf32>
    %110 = arith.addf %108, %109 : vector<8x128xf32>
    %c3_i32 = arith.constant 3 : i32
    %c8_i32_32 = arith.constant 8 : i32
    %111 = arith.muli %c3_i32, %c8_i32_32 : i32
    %112 = tpu.assume_multiple %111, 8 : i32
    %113 = arith.index_cast %112 : i32 to index
    %c0_33 = arith.constant 0 : index
    %114 = vector.load %arg10[%113, %c0_33] : memref<64x384xf32, #tpu.memory_space<vmem>>, vector<8x384xf32>
    %cst_34 = arith.constant dense<0.000000e+00> : vector<8x384xf32>
    %115 = tpu.matmul %110, %10, %cst_34 {dimension_numbers = #tpu.dot_dimension_numbers<[1], [0], [0], [1], [0, 0, 1, 1], [], []>} : vector<8x128xf32>, vector<128x384xf32>, vector<8x384xf32> -> vector<8x384xf32>
    %116 = arith.addf %115, %13 : vector<8x384xf32>
    %117 = vector.extract_strided_slice %114 {offsets = [0, 0], sizes = [8, 128], strides = [1, 1]} : vector<8x384xf32> to vector<8x128xf32>
    %118 = vector.extract_strided_slice %116 {offsets = [0, 0], sizes = [8, 128], strides = [1, 1]} : vector<8x384xf32> to vector<8x128xf32>
    %119 = arith.addf %117, %118 : vector<8x128xf32>
    %120 = arith.negf %119 : vector<8x128xf32>
    %121 = math.exp %120 : vector<8x128xf32>
    %cst_35 = arith.constant 1.000000e+00 : f32
    %122 = vector.broadcast %cst_35 : f32 to vector<8x128xf32>
    %123 = arith.addf %122, %121 : vector<8x128xf32>
    %124 = arith.divf %122, %123 : vector<8x128xf32>
    %125 = vector.extract_strided_slice %114 {offsets = [0, 128], sizes = [8, 128], strides = [1, 1]} : vector<8x384xf32> to vector<8x128xf32>
    %126 = vector.extract_strided_slice %116 {offsets = [0, 128], sizes = [8, 128], strides = [1, 1]} : vector<8x384xf32> to vector<8x128xf32>
    %127 = arith.addf %125, %126 : vector<8x128xf32>
    %128 = arith.negf %127 : vector<8x128xf32>
    %129 = math.exp %128 : vector<8x128xf32>
    %cst_36 = arith.constant 1.000000e+00 : f32
    %130 = vector.broadcast %cst_36 : f32 to vector<8x128xf32>
    %131 = arith.addf %130, %129 : vector<8x128xf32>
    %132 = arith.divf %130, %131 : vector<8x128xf32>
    %133 = vector.extract_strided_slice %114 {offsets = [0, 256], sizes = [8, 128], strides = [1, 1]} : vector<8x384xf32> to vector<8x128xf32>
    %134 = vector.extract_strided_slice %116 {offsets = [0, 256], sizes = [8, 128], strides = [1, 1]} : vector<8x384xf32> to vector<8x128xf32>
    %135 = arith.mulf %124, %134 : vector<8x128xf32>
    %136 = arith.addf %133, %135 : vector<8x128xf32>
    %137 = math.tanh %136 : vector<8x128xf32>
    %cst_37 = arith.constant 1.000000e+00 : f32
    %138 = vector.broadcast %cst_37 : f32 to vector<8x128xf32>
    %139 = arith.subf %138, %132 : vector<8x128xf32>
    %140 = arith.mulf %139, %137 : vector<8x128xf32>
    %141 = arith.mulf %132, %110 : vector<8x128xf32>
    %142 = arith.addf %140, %141 : vector<8x128xf32>
    %c4_i32 = arith.constant 4 : i32
    %c8_i32_38 = arith.constant 8 : i32
    %143 = arith.muli %c4_i32, %c8_i32_38 : i32
    %144 = tpu.assume_multiple %143, 8 : i32
    %145 = arith.index_cast %144 : i32 to index
    %c0_39 = arith.constant 0 : index
    %146 = vector.load %arg10[%145, %c0_39] : memref<64x384xf32, #tpu.memory_space<vmem>>, vector<8x384xf32>
    %cst_40 = arith.constant dense<0.000000e+00> : vector<8x384xf32>
    %147 = tpu.matmul %142, %10, %cst_40 {dimension_numbers = #tpu.dot_dimension_numbers<[1], [0], [0], [1], [0, 0, 1, 1], [], []>} : vector<8x128xf32>, vector<128x384xf32>, vector<8x384xf32> -> vector<8x384xf32>
    %148 = arith.addf %147, %13 : vector<8x384xf32>
    %149 = vector.extract_strided_slice %146 {offsets = [0, 0], sizes = [8, 128], strides = [1, 1]} : vector<8x384xf32> to vector<8x128xf32>
    %150 = vector.extract_strided_slice %148 {offsets = [0, 0], sizes = [8, 128], strides = [1, 1]} : vector<8x384xf32> to vector<8x128xf32>
    %151 = arith.addf %149, %150 : vector<8x128xf32>
    %152 = arith.negf %151 : vector<8x128xf32>
    %153 = math.exp %152 : vector<8x128xf32>
    %cst_41 = arith.constant 1.000000e+00 : f32
    %154 = vector.broadcast %cst_41 : f32 to vector<8x128xf32>
    %155 = arith.addf %154, %153 : vector<8x128xf32>
    %156 = arith.divf %154, %155 : vector<8x128xf32>
    %157 = vector.extract_strided_slice %146 {offsets = [0, 128], sizes = [8, 128], strides = [1, 1]} : vector<8x384xf32> to vector<8x128xf32>
    %158 = vector.extract_strided_slice %148 {offsets = [0, 128], sizes = [8, 128], strides = [1, 1]} : vector<8x384xf32> to vector<8x128xf32>
    %159 = arith.addf %157, %158 : vector<8x128xf32>
    %160 = arith.negf %159 : vector<8x128xf32>
    %161 = math.exp %160 : vector<8x128xf32>
    %cst_42 = arith.constant 1.000000e+00 : f32
    %162 = vector.broadcast %cst_42 : f32 to vector<8x128xf32>
    %163 = arith.addf %162, %161 : vector<8x128xf32>
    %164 = arith.divf %162, %163 : vector<8x128xf32>
    %165 = vector.extract_strided_slice %146 {offsets = [0, 256], sizes = [8, 128], strides = [1, 1]} : vector<8x384xf32> to vector<8x128xf32>
    %166 = vector.extract_strided_slice %148 {offsets = [0, 256], sizes = [8, 128], strides = [1, 1]} : vector<8x384xf32> to vector<8x128xf32>
    %167 = arith.mulf %156, %166 : vector<8x128xf32>
    %168 = arith.addf %165, %167 : vector<8x128xf32>
    %169 = math.tanh %168 : vector<8x128xf32>
    %cst_43 = arith.constant 1.000000e+00 : f32
    %170 = vector.broadcast %cst_43 : f32 to vector<8x128xf32>
    %171 = arith.subf %170, %164 : vector<8x128xf32>
    %172 = arith.mulf %171, %169 : vector<8x128xf32>
    %173 = arith.mulf %164, %142 : vector<8x128xf32>
    %174 = arith.addf %172, %173 : vector<8x128xf32>
    %c5_i32 = arith.constant 5 : i32
    %c8_i32_44 = arith.constant 8 : i32
    %175 = arith.muli %c5_i32, %c8_i32_44 : i32
    %176 = tpu.assume_multiple %175, 8 : i32
    %177 = arith.index_cast %176 : i32 to index
    %c0_45 = arith.constant 0 : index
    %178 = vector.load %arg10[%177, %c0_45] : memref<64x384xf32, #tpu.memory_space<vmem>>, vector<8x384xf32>
    %cst_46 = arith.constant dense<0.000000e+00> : vector<8x384xf32>
    %179 = tpu.matmul %174, %10, %cst_46 {dimension_numbers = #tpu.dot_dimension_numbers<[1], [0], [0], [1], [0, 0, 1, 1], [], []>} : vector<8x128xf32>, vector<128x384xf32>, vector<8x384xf32> -> vector<8x384xf32>
    %180 = arith.addf %179, %13 : vector<8x384xf32>
    %181 = vector.extract_strided_slice %178 {offsets = [0, 0], sizes = [8, 128], strides = [1, 1]} : vector<8x384xf32> to vector<8x128xf32>
    %182 = vector.extract_strided_slice %180 {offsets = [0, 0], sizes = [8, 128], strides = [1, 1]} : vector<8x384xf32> to vector<8x128xf32>
    %183 = arith.addf %181, %182 : vector<8x128xf32>
    %184 = arith.negf %183 : vector<8x128xf32>
    %185 = math.exp %184 : vector<8x128xf32>
    %cst_47 = arith.constant 1.000000e+00 : f32
    %186 = vector.broadcast %cst_47 : f32 to vector<8x128xf32>
    %187 = arith.addf %186, %185 : vector<8x128xf32>
    %188 = arith.divf %186, %187 : vector<8x128xf32>
    %189 = vector.extract_strided_slice %178 {offsets = [0, 128], sizes = [8, 128], strides = [1, 1]} : vector<8x384xf32> to vector<8x128xf32>
    %190 = vector.extract_strided_slice %180 {offsets = [0, 128], sizes = [8, 128], strides = [1, 1]} : vector<8x384xf32> to vector<8x128xf32>
    %191 = arith.addf %189, %190 : vector<8x128xf32>
    %192 = arith.negf %191 : vector<8x128xf32>
    %193 = math.exp %192 : vector<8x128xf32>
    %cst_48 = arith.constant 1.000000e+00 : f32
    %194 = vector.broadcast %cst_48 : f32 to vector<8x128xf32>
    %195 = arith.addf %194, %193 : vector<8x128xf32>
    %196 = arith.divf %194, %195 : vector<8x128xf32>
    %197 = vector.extract_strided_slice %178 {offsets = [0, 256], sizes = [8, 128], strides = [1, 1]} : vector<8x384xf32> to vector<8x128xf32>
    %198 = vector.extract_strided_slice %180 {offsets = [0, 256], sizes = [8, 128], strides = [1, 1]} : vector<8x384xf32> to vector<8x128xf32>
    %199 = arith.mulf %188, %198 : vector<8x128xf32>
    %200 = arith.addf %197, %199 : vector<8x128xf32>
    %201 = math.tanh %200 : vector<8x128xf32>
    %cst_49 = arith.constant 1.000000e+00 : f32
    %202 = vector.broadcast %cst_49 : f32 to vector<8x128xf32>
    %203 = arith.subf %202, %196 : vector<8x128xf32>
    %204 = arith.mulf %203, %201 : vector<8x128xf32>
    %205 = arith.mulf %196, %174 : vector<8x128xf32>
    %206 = arith.addf %204, %205 : vector<8x128xf32>
    %c6_i32 = arith.constant 6 : i32
    %c8_i32_50 = arith.constant 8 : i32
    %207 = arith.muli %c6_i32, %c8_i32_50 : i32
    %208 = tpu.assume_multiple %207, 8 : i32
    %209 = arith.index_cast %208 : i32 to index
    %c0_51 = arith.constant 0 : index
    %210 = vector.load %arg10[%209, %c0_51] : memref<64x384xf32, #tpu.memory_space<vmem>>, vector<8x384xf32>
    %cst_52 = arith.constant dense<0.000000e+00> : vector<8x384xf32>
    %211 = tpu.matmul %206, %10, %cst_52 {dimension_numbers = #tpu.dot_dimension_numbers<[1], [0], [0], [1], [0, 0, 1, 1], [], []>} : vector<8x128xf32>, vector<128x384xf32>, vector<8x384xf32> -> vector<8x384xf32>
    %212 = arith.addf %211, %13 : vector<8x384xf32>
    %213 = vector.extract_strided_slice %210 {offsets = [0, 0], sizes = [8, 128], strides = [1, 1]} : vector<8x384xf32> to vector<8x128xf32>
    %214 = vector.extract_strided_slice %212 {offsets = [0, 0], sizes = [8, 128], strides = [1, 1]} : vector<8x384xf32> to vector<8x128xf32>
    %215 = arith.addf %213, %214 : vector<8x128xf32>
    %216 = arith.negf %215 : vector<8x128xf32>
    %217 = math.exp %216 : vector<8x128xf32>
    %cst_53 = arith.constant 1.000000e+00 : f32
    %218 = vector.broadcast %cst_53 : f32 to vector<8x128xf32>
    %219 = arith.addf %218, %217 : vector<8x128xf32>
    %220 = arith.divf %218, %219 : vector<8x128xf32>
    %221 = vector.extract_strided_slice %210 {offsets = [0, 128], sizes = [8, 128], strides = [1, 1]} : vector<8x384xf32> to vector<8x128xf32>
    %222 = vector.extract_strided_slice %212 {offsets = [0, 128], sizes = [8, 128], strides = [1, 1]} : vector<8x384xf32> to vector<8x128xf32>
    %223 = arith.addf %221, %222 : vector<8x128xf32>
    %224 = arith.negf %223 : vector<8x128xf32>
    %225 = math.exp %224 : vector<8x128xf32>
    %cst_54 = arith.constant 1.000000e+00 : f32
    %226 = vector.broadcast %cst_54 : f32 to vector<8x128xf32>
    %227 = arith.addf %226, %225 : vector<8x128xf32>
    %228 = arith.divf %226, %227 : vector<8x128xf32>
    %229 = vector.extract_strided_slice %210 {offsets = [0, 256], sizes = [8, 128], strides = [1, 1]} : vector<8x384xf32> to vector<8x128xf32>
    %230 = vector.extract_strided_slice %212 {offsets = [0, 256], sizes = [8, 128], strides = [1, 1]} : vector<8x384xf32> to vector<8x128xf32>
    %231 = arith.mulf %220, %230 : vector<8x128xf32>
    %232 = arith.addf %229, %231 : vector<8x128xf32>
    %233 = math.tanh %232 : vector<8x128xf32>
    %cst_55 = arith.constant 1.000000e+00 : f32
    %234 = vector.broadcast %cst_55 : f32 to vector<8x128xf32>
    %235 = arith.subf %234, %228 : vector<8x128xf32>
    %236 = arith.mulf %235, %233 : vector<8x128xf32>
    %237 = arith.mulf %228, %206 : vector<8x128xf32>
    %238 = arith.addf %236, %237 : vector<8x128xf32>
    %c7_i32 = arith.constant 7 : i32
    %c8_i32_56 = arith.constant 8 : i32
    %239 = arith.muli %c7_i32, %c8_i32_56 : i32
    %240 = tpu.assume_multiple %239, 8 : i32
    %241 = arith.index_cast %240 : i32 to index
    %c0_57 = arith.constant 0 : index
    %242 = vector.load %arg10[%241, %c0_57] : memref<64x384xf32, #tpu.memory_space<vmem>>, vector<8x384xf32>
    %cst_58 = arith.constant dense<0.000000e+00> : vector<8x384xf32>
    %243 = tpu.matmul %238, %10, %cst_58 {dimension_numbers = #tpu.dot_dimension_numbers<[1], [0], [0], [1], [0, 0, 1, 1], [], []>} : vector<8x128xf32>, vector<128x384xf32>, vector<8x384xf32> -> vector<8x384xf32>
    %244 = arith.addf %243, %13 : vector<8x384xf32>
    %245 = vector.extract_strided_slice %242 {offsets = [0, 0], sizes = [8, 128], strides = [1, 1]} : vector<8x384xf32> to vector<8x128xf32>
    %246 = vector.extract_strided_slice %244 {offsets = [0, 0], sizes = [8, 128], strides = [1, 1]} : vector<8x384xf32> to vector<8x128xf32>
    %247 = arith.addf %245, %246 : vector<8x128xf32>
    %248 = arith.negf %247 : vector<8x128xf32>
    %249 = math.exp %248 : vector<8x128xf32>
    %cst_59 = arith.constant 1.000000e+00 : f32
    %250 = vector.broadcast %cst_59 : f32 to vector<8x128xf32>
    %251 = arith.addf %250, %249 : vector<8x128xf32>
    %252 = arith.divf %250, %251 : vector<8x128xf32>
    %253 = vector.extract_strided_slice %242 {offsets = [0, 128], sizes = [8, 128], strides = [1, 1]} : vector<8x384xf32> to vector<8x128xf32>
    %254 = vector.extract_strided_slice %244 {offsets = [0, 128], sizes = [8, 128], strides = [1, 1]} : vector<8x384xf32> to vector<8x128xf32>
    %255 = arith.addf %253, %254 : vector<8x128xf32>
    %256 = arith.negf %255 : vector<8x128xf32>
    %257 = math.exp %256 : vector<8x128xf32>
    %cst_60 = arith.constant 1.000000e+00 : f32
    %258 = vector.broadcast %cst_60 : f32 to vector<8x128xf32>
    %259 = arith.addf %258, %257 : vector<8x128xf32>
    %260 = arith.divf %258, %259 : vector<8x128xf32>
    %261 = vector.extract_strided_slice %242 {offsets = [0, 256], sizes = [8, 128], strides = [1, 1]} : vector<8x384xf32> to vector<8x128xf32>
    %262 = vector.extract_strided_slice %244 {offsets = [0, 256], sizes = [8, 128], strides = [1, 1]} : vector<8x384xf32> to vector<8x128xf32>
    %263 = arith.mulf %252, %262 : vector<8x128xf32>
    %264 = arith.addf %261, %263 : vector<8x128xf32>
    %265 = math.tanh %264 : vector<8x128xf32>
    %cst_61 = arith.constant 1.000000e+00 : f32
    %266 = vector.broadcast %cst_61 : f32 to vector<8x128xf32>
    %267 = arith.subf %266, %260 : vector<8x128xf32>
    %268 = arith.mulf %267, %265 : vector<8x128xf32>
    %269 = arith.mulf %260, %238 : vector<8x128xf32>
    %270 = arith.addf %268, %269 : vector<8x128xf32>
    %c8_i32_62 = arith.constant 8 : i32
    %c0_63 = arith.constant 0 : index
    %c0_64 = arith.constant 0 : index
    %271 = vector.load %arg11[%c0_63, %c0_64] : memref<8x128xf32, #tpu.memory_space<vmem>>, vector<8x128xf32>
    tpu.vector_store %arg11[%c0_63, %c0_64], %270 {strides = array<i32>} : memref<8x128xf32, #tpu.memory_space<vmem>>, vector<8x128xf32>,
    %c0_i32_65 = arith.constant 0 : i32
    %272 = arith.cmpi eq, %arg1, %c0_i32_65 : i32
    %273 = arith.extui %272 : i1 to i32
    %c0_i32_66 = arith.constant 0 : i32
    %274 = arith.cmpi ne, %273, %c0_i32_66 : i32
    scf.if %274 {
      %c0_67 = arith.constant 0 : index
      %c0_68 = arith.constant 0 : index
      %275 = vector.load %arg11[%c0_67, %c0_68] : memref<8x128xf32, #tpu.memory_space<vmem>>, vector<8x128xf32>
      %c0_69 = arith.constant 0 : index
      %c0_70 = arith.constant 0 : index
      %276 = vector.load %arg7[%c0_69, %c0_70] : memref<128x128xf32, #tpu.memory_space<vmem>>, vector<128x128xf32>
      %cst_71 = arith.constant dense<0.000000e+00> : vector<8x128xf32>
      %277 = tpu.matmul %275, %276, %cst_71 {dimension_numbers = #tpu.dot_dimension_numbers<[1], [0], [0], [1], [0, 0, 1, 1], [], []>} : vector<8x128xf32>, vector<128x128xf32>, vector<8x128xf32> -> vector<8x128xf32>
      %c0_72 = arith.constant 0 : index
      %c0_73 = arith.constant 0 : index
      %278 = vector.load %arg8[%c0_72, %c0_73] : memref<1x128xf32, #tpu.memory_space<vmem>>, vector<1x128xf32>
      %279 = vector.broadcast %278 : vector<1x128xf32> to vector<8x128xf32>
      %280 = arith.addf %277, %279 : vector<8x128xf32>
      %c0_74 = arith.constant 0 : index
      %c0_75 = arith.constant 0 : index
      %281 = vector.load %arg9[%c0_74, %c0_75] : memref<8x128xf32, #tpu.memory_space<vmem>>, vector<8x128xf32>
      tpu.vector_store %arg9[%c0_74, %c0_75], %280 {strides = array<i32>} : memref<8x128xf32, #tpu.memory_space<vmem>>, vector<8x128xf32>,
    } else {
    }
    return
  }
  func.func @transform_0(%arg0: i32, %arg1: i32) -> (i32, i32) {
    %c1_i32 = arith.constant 1 : i32
    %0 = arith.muli %arg0, %c1_i32 : i32
    %1 = arith.addi %0, %arg1 : i32
    %c0_i32 = arith.constant 0 : i32
    %c0_i32_0 = arith.constant 0 : i32
    return %1, %c0_i32 : i32, i32
  }
  func.func @transform_1(%arg0: i32, %arg1: i32) -> (i32, i32) {
    %c0_i32 = arith.constant 0 : i32
    %c0_i32_0 = arith.constant 0 : i32
    %c0_i32_1 = arith.constant 0 : i32
    return %c0_i32, %c0_i32_0 : i32, i32
  }
  func.func @transform_2(%arg0: i32, %arg1: i32) -> (i32, i32) {
    %c0_i32 = arith.constant 0 : i32
    %c0_i32_0 = arith.constant 0 : i32
    %c0_i32_1 = arith.constant 0 : i32
    return %c0_i32, %c0_i32_0 : i32, i32
  }
  func.func @transform_3(%arg0: i32, %arg1: i32) -> (i32, i32) {
    %c0_i32 = arith.constant 0 : i32
    %c0_i32_0 = arith.constant 0 : i32
    %c0_i32_1 = arith.constant 0 : i32
    return %c0_i32, %c0_i32_0 : i32, i32
  }
  func.func @transform_4(%arg0: i32, %arg1: i32) -> (i32, i32) {
    %c0_i32 = arith.constant 0 : i32
    %c0_i32_0 = arith.constant 0 : i32
    %c0_i32_1 = arith.constant 0 : i32
    return %c0_i32, %c0_i32_0 : i32, i32
  }
  func.func @transform_5(%arg0: i32, %arg1: i32) -> (i32, i32) {
    %c0_i32 = arith.constant 0 : i32
    %c0_i32_0 = arith.constant 0 : i32
    %c0_i32_1 = arith.constant 0 : i32
    return %c0_i32, %c0_i32_0 : i32, i32
  }
  func.func @transform_6(%arg0: i32, %arg1: i32) -> (i32, i32) {
    %c0_i32 = arith.constant 0 : i32
    %c0_i32_0 = arith.constant 0 : i32
    %c0_i32_1 = arith.constant 0 : i32
    return %c0_i32, %c0_i32_0 : i32, i32
  }
  func.func @transform_7(%arg0: i32, %arg1: i32) -> (i32, i32) {
    %c0_i32 = arith.constant 0 : i32
    %c0_i32_0 = arith.constant 0 : i32
    return %arg0, %c0_i32 : i32, i32
  }
}

</mosaic_0001>

<bundles_post_ra>
// kernel: tpu_custom_call.1
= control target key start
LH: loop header
LB: loop body
LE: loop exit
PB: predicated region body
PF: predicated region fallthrough
CT: control target
= control target key end

     0   :  { %12 = vsyncpa [#allocation5], 0  ;;  %s3731_s0 = inlined_call_operand.hbm [shape: f32[64,128], index: 0, kind: input, shape index: {}]   ;;  %s3732_s1 = inlined_call_operand.hbm [shape: f32[128,384], index: 1, kind: input, shape index: {}]   ;;  %s3733_s2 = inlined_call_operand.hbm [shape: f32[128,384], index: 2, kind: input, shape index: {}]   ;;  %s3734_s3 = inlined_call_operand.vmem [shape: f32[1,384], index: 3, kind: input, shape index: {}]   ;;  %s3735_s4 = inlined_call_operand.vmem [shape: f32[1,384], index: 4, kind: input, shape index: {}]   ;;  %s3736_s5 = inlined_call_operand.hbm [shape: f32[128,128], index: 5, kind: input, shape index: {}]   ;;  %s3737_s6 = inlined_call_operand.vmem [shape: f32[1,128], index: 6, kind: input, shape index: {}]   ;;  %s3738_s7 = inlined_call_operand.hbm [shape: f32[8,128], index: 7, kind: output, shape index: {}]  }
   0x1   :  { %13 = vsyncpa [#allocation8], 0 }
   0x2   :  { %14 = vsyncpa [#allocation11], 0 }
   0x3   :  { %15 = vsyncpa [#allocation6], 0  ;;  %s2741_s24 = smov [#allocation7]  }
   0x4   :  { %s37_s25 = sshll.u32 %s2741_s24, 4  ;;  %s38_s25 = int_to_ptr.vmem [resolvable:$true] %s37_s25 }
   0x5   :  { %s2641_s26 = scalar_lea.vmem %s38_s25, 6144  ;;  %p2646_p1 = scmp.lt.s32.totalorder %s38_s25, %s38_s25 }
   0x6   :  { %p2642_p0 = scmp.ne.s32.totalorder %s38_s25, %s2641_s26  ;;  %p2647_p2 = scmp.lt.s32.totalorder %s2641_s26, %s2641_s26 }
   0x8   :  { %p2648_p3 = por %p2647_p2, %p2646_p1 }
   0xa   :  { %p2649_p4 = pnand %p2648_p3, %p2642_p0 }
   0xc   :  { %2652 = shalt.err (!%p2649_p4)
}
   0xd   :  { %s2742_s27 = smov 384   ;;  %s2743_s28 = smov 24  }
   0xe   :  { %43 = dma.hbm_to_vmem [thread:$0]  %s3732_s1, 6144, %s38_s25, [#allocation8], %s2742_s27, %s2742_s27, %s2743_s28  }
   0xf   :  { %s2744_s8 = smov [#allocation4]  }
  0x10   :  { %s25_s9 = sshll.u32 %s2744_s8, 4  ;;  %s26_s9 = int_to_ptr.vmem [resolvable:$true] %s25_s9 }
  0x11   :  { %s2661_s10 = scalar_lea.vmem %s26_s9, 1024  ;;  %p2666_p6 = scmp.lt.s32.totalorder %s26_s9, %s26_s9 }
  0x12   :  { %p2662_p5 = scmp.ne.s32.totalorder %s26_s9, %s2661_s10  ;;  %p2667_p7 = scmp.lt.s32.totalorder %s2661_s10, %s2661_s10 }
  0x14   :  { %p2668_p8 = por %p2667_p7, %p2666_p6 }
  0x16   :  { %p2669_p9 = pnand %p2668_p8, %p2662_p5 }
  0x18   :  { %2672 = shalt.err (!%p2669_p9)
}
  0x19   :  { %s2745_s11 = smov 128   ;;  %s2746_s12 = smov 8  }
  0x1a   :  { %31 = dma.hbm_to_vmem [thread:$0]  %s3731_s0, 1024, %s26_s9, [#allocation5], %s2745_s11, %s2745_s11, %s2746_s12  }
  0x1b   :  { %s2747_s15 = smov [#allocation9]   ;;  %s2748_s17 = smov [#allocation10]  }
  0x1c   :  { %s49_s16 = sshll.u32 %s2747_s15, 4  ;;  %s65_s1 = sshll.u32 %s2748_s17, 4  ;;  %s50_s16 = int_to_ptr.vmem [resolvable:$true] %s49_s16  ;;  %s66_s1 = int_to_ptr.vmem [resolvable:$true] %s65_s1 }
  0x1d   :  { %s2681_s18 = scalar_lea.vmem %s50_s16, 6144  ;;  %p2686_p11 = scmp.lt.s32.totalorder %s50_s16, %s50_s16 }
  0x1e   :  { %p2682_p10 = scmp.ne.s32.totalorder %s50_s16, %s2681_s18  ;;  %p2687_p12 = scmp.lt.s32.totalorder %s2681_s18, %s2681_s18 }
  0x20   :  { %p2688_p13 = por %p2687_p12, %p2686_p11 }
  0x22   :  { %p2689_p0 = pnand %p2688_p13, %p2682_p10 }
  0x24   :  { %2692 = shalt.err (!%p2689_p0)
}
  0x25   :  { %55 = dma.hbm_to_vmem [thread:$0]  %s3733_s2, 6144, %s50_s16, [#allocation8], %s2742_s27, %s2742_s27, %s2743_s28  }
  0x26   :  { %s2701_s0 = scalar_lea.vmem %s66_s1, 2048  ;;  %p2706_p2 = scmp.lt.s32.totalorder %s66_s1, %s66_s1 }
  0x27   :  { %p2702_p1 = scmp.ne.s32.totalorder %s66_s1, %s2701_s0  ;;  %p2707_p3 = scmp.lt.s32.totalorder %s2701_s0, %s2701_s0 }
  0x29   :  { %p2708_p4 = por %p2707_p3, %p2706_p2 }
  0x2b   :  { %p2709_p5 = pnand %p2708_p4, %p2702_p1 }
  0x2d   :  { %2712 = shalt.err (!%p2709_p5)
}
  0x2e   :  { %71 = dma.hbm_to_vmem [thread:$0]  %s3736_s5, 2048, %s66_s1, [#allocation11], %s2745_s11, %s2745_s11, %s2746_s12  }
  0x2f   :  { %2733 = dma.done.wait [#allocation5], 1024  }
  0x30   :  { %2734 = vsyncadd [#allocation5], 4294966272 }
  0x31   :  { %2735 = dma.done.wait [#allocation8], 12288  }
  0x32   :  { %2736 = vsyncadd [#allocation8], 4294955008 }
  0x33   :  { %2737 = dma.done.wait [#allocation11], 2048  }
  0x34   :  { %2738 = vsyncadd [#allocation11], 4294965248  ;;  %v3739_v0 = vmov 0.0   ;;  %v147_v1 = vld [vmem:[#allocation7 + $0x170] sm:$0xff]  ;;  %v146_v2 = vld [vmem:[#allocation7 + $0x168] sm:$0xff]  ;;  %vm2750_vm0 = vmmov 0  }
  0x35   :  { %230 = vmatprep.mubr.f32.mxu0 %v3739_v0  ;;  %v144_v3 = vld [vmem:[#allocation7 + $0x158] sm:$0xff]  ;;  %166 = vmatprep.subr.mxu0 %v147_v1  ;;  %v143_v4 = vld [vmem:[#allocation7 + $0x150] sm:$0xff]  ;;  %v141_v5 = vld [vmem:[#allocation7 + $0x140] sm:$0xff]  ;;  %s2751_s25 = smov [#allocation12]  }
  0x36   :  { %167 = vmatpush1.msra.mxu0 %v146_v2  ;;  %v140_v6 = vld [vmem:[#allocation7 + $0x138] sm:$0xff]  ;;  %v138_v7 = vld [vmem:[#allocation7 + $0x128] sm:$0xff]  ;;  %v137_v8 = vld [vmem:[#allocation7 + $0x120] sm:$0xff]  ;;  %s1923_s26 = sshll.u32 %s2751_s25, 4  ;;  %s1924_s26 = int_to_ptr.vmem [resolvable:$true] %s1923_s26 }
  0x37   :  { %168 = vmatprep.subr.mxu0 %v144_v3  ;;  %v135_v9 = vld [vmem:[#allocation7 + $0x110] sm:$0xff]  ;;  %v134_v10 = vld [vmem:[#allocation7 + $0x108] sm:$0xff]  ;;  %v132_v11 = vld [vmem:[#allocation7 + $0xf8] sm:$0xff]  ;;  %s2713_s27 = scalar_lea.vmem %s1924_s26, 128  ;;  %p2718_p7 = scmp.lt.s32.totalorder %s1924_s26, %s1924_s26 }
  0x38   :  { %169 = vmatpush1.msra.mxu0 %v143_v4  ;;  %v131_v12 = vld [vmem:[#allocation7 + $0xf0] sm:$0xff]  ;;  %v129_v13 = vld [vmem:[#allocation7 + $0xe0] sm:$0xff]  ;;  %v128_v15 = vld [vmem:[#allocation7 + $0xd8] sm:$0xff]  ;;  %p2714_p6 = scmp.ne.s32.totalorder %s1924_s26, %s2713_s27  ;;  %p2719_p8 = scmp.lt.s32.totalorder %s2713_s27, %s2713_s27 }
  0x39   :  { %170 = vmatprep.subr.mxu0 %v141_v5  ;;  %v2811_v14 = vld [vmem:[#allocation4] sm:$0xff]  ;;  %v148_v16 = vld [vmem:[#allocation7 + $0x178] sm:$0xff]  ;;  %v126_v17 = vld [vmem:[#allocation7 + $0xc8] sm:$0xff] }
  0x3a   :  { %171 = vmatpush1.msra.mxu0 %v140_v6  ;;  %2167 = vmatprep.mubr.f32.mxu1 %v2811_v14  ;;  %v145_v18 = vld [vmem:[#allocation7 + $0x160] sm:$0xff]  ;;  %v142_v20 = vld [vmem:[#allocation7 + $0x148] sm:$0xff]  ;;  %v123_v21 = vld [vmem:[#allocation7 + $0xb0] sm:$0xff]  ;;  %p2720_p9 = por %p2719_p8, %p2718_p7 }
  0x3b   :  { %172 = vmatprep.subr.mxu0 %v138_v7  ;;  %2135 = vmatprep.subr.mxu1 %v148_v16  ;;  %v125_v19 = vld [vmem:[#allocation7 + $0xc0] sm:$0xff]  ;;  %v122_v22 = vld [vmem:[#allocation7 + $0xa8] sm:$0xff]  ;;  %v139_v23 = vld [vmem:[#allocation7 + $0x130] sm:$0xff] }
  0x3c   :  { %173 = vmatpush1.msra.mxu0 %v137_v8  ;;  %2136 = vmatpush3.msra.mxu1 %v148_v16  ;;  %v120_v24 = vld [vmem:[#allocation7 + $0x98] sm:$0xff]  ;;  %v119_v25 = vld [vmem:[#allocation7 + $0x90] sm:$0xff]  ;;  %v117_v27 = vld [vmem:[#allocation7 + $0x80] sm:$0xff]  ;;  %p2721_p10 = pnand %p2720_p9, %p2714_p6 }
  0x3d   :  { %174 = vmatprep.subr.mxu0 %v135_v9  ;;  %2137 = vmatprep.subr.mxu1 %v145_v18  ;;  %v136_v26 = vld [vmem:[#allocation7 + $0x118] sm:$0xff]  ;;  %v133_v29 = vld [vmem:[#allocation7 + $0x100] sm:$0xff]  ;;  %v114_v30 = vld [vmem:[#allocation7 + $0x68] sm:$0xff] }
  0x3e   :  { %175 = vmatpush1.msra.mxu0 %v134_v10  ;;  %2138 = vmatpush3.msra.mxu1 %v145_v18  ;;  %v116_v28 = vld [vmem:[#allocation7 + $0x78] sm:$0xff]  ;;  %v113_v31 = vld [vmem:[#allocation7 + $0x60] sm:$0xff]  ;;  %v130_v32 = vld [vmem:[#allocation7 + $0xe8] sm:$0xff] }
  0x3f   :  { %176 = vmatprep.subr.mxu0 %v132_v11  ;;  %2139 = vmatprep.subr.mxu1 %v142_v20  ;;  %v111_v33 = vld [vmem:[#allocation7 + $0x50] sm:$0xff]  ;;  %v110_v34 = vld [vmem:[#allocation7 + $0x48] sm:$0xff]  ;;  %v108_v36 = vld [vmem:[#allocation7 + $0x38] sm:$0xff] }
  0x40   :  { %177 = vmatpush1.msra.mxu0 %v131_v12  ;;  %2140 = vmatpush3.msra.mxu1 %v142_v20  ;;  %v127_v35 = vld [vmem:[#allocation7 + $0xd0] sm:$0xff]  ;;  %v124_v38 = vld [vmem:[#allocation7 + $0xb8] sm:$0xff]  ;;  %v105_v39 = vld [vmem:[#allocation7 + $0x20] sm:$0xff] }
  0x41   :  { %178 = vmatprep.subr.mxu0 %v129_v13  ;;  %2141 = vmatprep.subr.mxu1 %v139_v23  ;;  %v107_v37 = vld [vmem:[#allocation7 + $0x30] sm:$0xff]  ;;  %v104_v40 = vld [vmem:[#allocation7 + $0x18] sm:$0xff]  ;;  %v121_v41 = vld [vmem:[#allocation7 + $0xa0] sm:$0xff] }
  0x42   :  { %179 = vmatpush1.msra.mxu0 %v128_v15  ;;  %2142 = vmatpush3.msra.mxu1 %v139_v23  ;;  %v102_v42 = vld [vmem:[#allocation7 + $0x8] sm:$0xff]  ;;  %v101_v43 = vld [vmem:[#allocation7] sm:$0xff]  ;;  %v2814_v45 = vld [vmem:[#allocation9 + $0x170] sm:$0xff] }
  0x43   :  { %180 = vmatprep.subr.mxu0 %v126_v17  ;;  %2143 = vmatprep.subr.mxu1 %v136_v26  ;;  %v118_v44 = vld [vmem:[#allocation7 + $0x88] sm:$0xff]  ;;  %3767 = vst [vmem:[#allocation17_spill] sm:$0xff] %v2814_v45  ;;  %v2818_v47 = vld [vmem:[#allocation9 + $0x158] sm:$0xff]  ;;  %v2822_v48 = vld [vmem:[#allocation9 + $0x150] sm:$0xff] }
  0x44   :  { %181 = vmatpush1.msra.mxu0 %v125_v19  ;;  %2144 = vmatpush3.msra.mxu1 %v136_v26  ;;  %v2816_v46 = vld [vmem:[#allocation9 + $0x168] sm:$0xff]  ;;  %v115_v49 = vld [vmem:[#allocation7 + $0x70] sm:$0xff]  ;;  %v2828_v51 = vld [vmem:[#allocation9 + $0x140] sm:$0xff] }
  0x45   :  { %182 = vmatprep.subr.mxu0 %v123_v21  ;;  %2145 = vmatprep.subr.mxu1 %v133_v29  ;;  %v2826_v50 = vld [vmem:[#allocation4 + $0x8] sm:$0xff]  ;;  %v2831_v52 = vld [vmem:[#allocation9 + $0x138] sm:$0xff]  ;;  %v2838_v54 = vld [vmem:[#allocation9 + $0x120] sm:$0xff] }
  0x46   :  { %183 = vmatpush1.msra.mxu0 %v122_v22  ;;  %2146 = vmatpush3.msra.mxu1 %v133_v29  ;;  %v2834_v53 = vld [vmem:[#allocation9 + $0x128] sm:$0xff]  ;;  %v112_v55 = vld [vmem:[#allocation7 + $0x58] sm:$0xff]  ;;  %v2842_v56 = vld [vmem:[#allocation4 + $0x10] sm:$0xff] }
  0x47   :  { %184 = vmatprep.subr.mxu0 %v120_v24  ;;  %2147 = vmatprep.subr.mxu1 %v130_v32  ;;  %v2844_v57 = vld [vmem:[#allocation9 + $0x110] sm:$0xff]  ;;  %v2847_v58 = vld [vmem:[#allocation9 + $0x108] sm:$0xff]  ;;  %v2850_v59 = vld [vmem:[#allocation9 + $0xf8] sm:$0xff] }
  0x48   :  { %185 = vmatpush1.msra.mxu0 %v119_v25  ;;  %2148 = vmatpush3.msra.mxu1 %v130_v32  ;;  %v2854_v60 = vld [vmem:[#allocation9 + $0xf0] sm:$0xff]  ;;  %v109_v61 = vld [vmem:[#allocation7 + $0x40] sm:$0xff]  ;;  %v2858_v62 = vld [vmem:[#allocation4 + $0x18] sm:$0xff] }
  0x49   :  { %186 = vmatprep.subr.mxu0 %v117_v27  ;;  %2149 = vmatprep.subr.mxu1 %v127_v35  ;;  %v2860_v63 = vld [vmem:[#allocation9 + $0xe0] sm:$0xff]  ;;  %v2863_v1 = vld [vmem:[#allocation9 + $0xd8] sm:$0xff]  ;;  %v2866_v2 = vld [vmem:[#allocation9 + $0xc8] sm:$0xff] }
  0x4a   :  { %187 = vmatpush1.msra.mxu0 %v116_v28  ;;  %2150 = vmatpush3.msra.mxu1 %v127_v35  ;;  %v2870_v3 = vld [vmem:[#allocation9 + $0xc0] sm:$0xff]  ;;  %v106_v4 = vld [vmem:[#allocation7 + $0x28] sm:$0xff]  ;;  %v2876_v6 = vld [vmem:[#allocation9 + $0xb0] sm:$0xff] }
  0x4b   :  { %188 = vmatprep.subr.mxu0 %v114_v30  ;;  %2151 = vmatprep.subr.mxu1 %v124_v38  ;;  %v2874_v5 = vld [vmem:[#allocation4 + $0x20] sm:$0xff]  ;;  %v2879_v7 = vld [vmem:[#allocation9 + $0xa8] sm:$0xff]  ;;  %v2882_v8 = vld [vmem:[#allocation9 + $0x98] sm:$0xff] }
  0x4c   :  { %189 = vmatpush1.msra.mxu0 %v113_v31  ;;  %2152 = vmatpush3.msra.mxu1 %v124_v38  ;;  %v2886_v9 = vld [vmem:[#allocation9 + $0x90] sm:$0xff]  ;;  %v98_v11 = vld [vmem:[#allocation4 + $0x28] sm:$0xff]  ;;  %v2890_v12 = vld [vmem:[#allocation9 + $0x80] sm:$0xff] }
  0x4d   :  { %190 = vmatprep.subr.mxu0 %v111_v33  ;;  %2153 = vmatprep.subr.mxu1 %v121_v41  ;;  %v103_v10 = vld [vmem:[#allocation7 + $0x10] sm:$0xff]  ;;  %v2893_v13 = vld [vmem:[#allocation9 + $0x78] sm:$0xff]  ;;  %v2899_v15 = vld [vmem:[#allocation9 + $0x60] sm:$0xff] }
  0x4e   :  { %191 = vmatpush1.msra.mxu0 %v110_v34  ;;  %2154 = vmatpush3.msra.mxu1 %v121_v41  ;;  %v99_v16 = vld [vmem:[#allocation4 + $0x30] sm:$0xff]  ;;  %v2906_v18 = vld [vmem:[#allocation9 + $0x48] sm:$0xff]  ;;  %v2909_v19 = vld [vmem:[#allocation9 + $0x38] sm:$0xff] }
  0x4f   :  { %192 = vmatprep.subr.mxu0 %v108_v36  ;;  %2155 = vmatprep.subr.mxu1 %v118_v44  ;;  %v2903_v17 = vld [vmem:[#allocation9 + $0x50] sm:$0xff]  ;;  %v2915_v21 = vld [vmem:[#allocation9 + $0x178] sm:$0xff]  ;;  %v2919_v23 = vld [vmem:[#allocation9 + $0x20] sm:$0xff] }
  0x50   :  { %193 = vmatpush1.msra.mxu0 %v107_v37  ;;  %2156 = vmatpush3.msra.mxu1 %v118_v44  ;;  %v2913_v20 = vld [vmem:[#allocation9 + $0x30] sm:$0xff]  ;;  %v100_v22 = vld [vmem:[#allocation4 + $0x38] sm:$0xff]  ;;  %3769 = vst [vmem:[#allocation19_spill] sm:$0xff] %v2919_v23  ;;  %v2926_v25 = vld [vmem:[#allocation9 + $0x8] sm:$0xff] }
  0x51   :  { %194 = vmatprep.subr.mxu0 %v105_v39  ;;  %2157 = vmatprep.subr.mxu1 %v115_v49  ;;  %3768 = vst [vmem:[#allocation18_spill] sm:$0xff] %v2913_v20  ;;  %v2922_v24 = vld [vmem:[#allocation9 + $0x18] sm:$0xff]  ;;  %3771 = vst [vmem:[#allocation21_spill] sm:$0xff] %v2926_v25  ;;  %v2930_v26 = vld [vmem:[#allocation9] sm:$0xff] }
  0x52   :  { %195 = vmatpush1.msra.mxu0 %v104_v40  ;;  %2158 = vmatpush3.msra.mxu1 %v115_v49  ;;  %3770 = vst [vmem:[#allocation20_spill] sm:$0xff] %v2922_v24  ;;  %3772 = vst [vmem:[#allocation22_spill] sm:$0xff] %v2930_v26  ;;  %v2932_v27 = vld [vmem:[#allocation9 + $0x160] sm:$0xff]  ;;  %v2938_v28 = vld [vmem:[#allocation9 + $0x148] sm:$0xff] }
  0x53   :  { %196 = vmatprep.subr.mxu0 %v102_v42  ;;  %2159 = vmatprep.subr.mxu1 %v112_v55  ;;  %v2944_v29 = vld [vmem:[#allocation9 + $0x130] sm:$0xff]  ;;  %v2949_v30 = vld [vmem:[#allocation9 + $0x118] sm:$0xff]  ;;  %v2955_v31 = vld [vmem:[#allocation9 + $0x100] sm:$0xff]  ;;  %v151_v42 = vlaneseq }
  0x54   :  { %197 = vmatpush1.msra.mxu0 %v101_v43  ;;  %2160 = vmatpush3.msra.mxu1 %v112_v55  ;;  %v2961_v32 = vld [vmem:[#allocation9 + $0xe8] sm:$0xff]  ;;  %v2965_v33 = vld [vmem:[#allocation9 + $0xd0] sm:$0xff]  ;;  %v2971_v34 = vld [vmem:[#allocation9 + $0xb8] sm:$0xff] }
  0x55   :  { %231 = vmatmul.mubr.f32.vlgmr.msra.gmra.mxu0 %v2811_v14  ;;  %480 = vmatprep.subr.mxu0 %v2814_v45  ;;  %v2896_v14 = vld [vmem:[#allocation9 + $0x68] sm:$0xff]  ;;  %v2977_v35 = vld [vmem:[#allocation9 + $0xa0] sm:$0xff]  ;;  %v2989_v37 = vld [vmem:[#allocation9 + $0x70] sm:$0xff]  ;;  %v3072_v43 = vshrl.u32 %v151_v42, 7 }
  0x56   :  { %481 = vmatpush1.msra.mxu0 %v2816_v46  ;;  %236 = vmatprep.mubr.f32.mxu0 %v3739_v0  ;;  %v2983_v36 = vld [vmem:[#allocation9 + $0x88] sm:$0xff]  ;;  %v2995_v38 = vld [vmem:[#allocation9 + $0x58] sm:$0xff]  ;;  %v3001_v39 = vld [vmem:[#allocation9 + $0x40] sm:$0xff] }
  0x57   :  { %482 = vmatprep.subr.mxu0 %v2818_v47  ;;  %2161 = vmatprep.subr.mxu1 %v109_v61  ;;  %3773 = vst [vmem:[#allocation23_spill] sm:$0xff] %v3001_v39  ;;  %v3007_v40 = vld [vmem:[#allocation9 + $0x28] sm:$0xff]  ;;  %v3013_v41 = vld [vmem:[#allocation9 + $0x10] sm:$0xff]  ;;  %v153_v44 = vsub.s32 0, %v3072_v43  ;;  %v149_v49 = vld [vmem:[%s3734_s3] sm:$0x7] }
  0x58   :  { %483 = vmatpush1.msra.mxu0 %v2822_v48  ;;  %2162 = vmatpush3.msra.mxu1 %v109_v61  ;;  %3774 = vst [vmem:[#allocation24_spill] sm:$0xff] %v3007_v40  ;;  %3775 = vst [vmem:[#allocation25_spill] sm:$0xff] %v3013_v41  ;;  %v157_v55 = vsub.s32 1, %v3072_v43 }
  0x59   :  { %237 = vmatmul.mubr.f32.gmra.mxu0 %v2826_v50  ;;  %484 = vmatprep.subr.mxu0 %v2828_v51  ;;  %v154_v61 = vrot.slane %v149_v49, %v153_v44 }
  0x5a   :  { %485 = vmatpush1.msra.mxu0 %v2831_v52  ;;  %242 = vmatprep.mubr.f32.mxu0 %v3739_v0 }
  0x5b   :  { %486 = vmatprep.subr.mxu0 %v2834_v53  ;;  %2163 = vmatprep.subr.mxu1 %v106_v4 }
  0x5c   :  { %487 = vmatpush1.msra.mxu0 %v2838_v54  ;;  %2164 = vmatpush3.msra.mxu1 %v106_v4  ;;  %v158_v4 = vrot.slane %v149_v49, %v157_v55 }
  0x5d   :  { %243 = vmatmul.mubr.f32.gmra.mxu0 %v2842_v56  ;;  %488 = vmatprep.subr.mxu0 %v2844_v57 }
  0x5e   :  { %489 = vmatpush1.msra.mxu0 %v2847_v58  ;;  %248 = vmatprep.mubr.f32.mxu0 %v3739_v0 }
  0x5f   :  { %490 = vmatprep.subr.mxu0 %v2850_v59  ;;  %2165 = vmatprep.subr.mxu1 %v103_v10 }
  0x60   :  { %491 = vmatpush1.msra.mxu0 %v2854_v60  ;;  %2166 = vmatpush3.msra.mxu1 %v103_v10 }
  0x61   :  { %249 = vmatmul.mubr.f32.gmra.mxu0 %v2858_v62  ;;  %492 = vmatprep.subr.mxu0 %v2860_v63 }
  0x62   :  { %493 = vmatpush1.msra.mxu0 %v2863_v1  ;;  %254 = vmatprep.mubr.f32.mxu0 %v3739_v0 }
  0x63   :  { %494 = vmatprep.subr.mxu0 %v2866_v2  ;;  %2179 = vmatprep.subr.mxu1 %v3739_v0 }
  0x64   :  { %495 = vmatpush1.msra.mxu0 %v2870_v3  ;;  %2168 = vmatmul.mubr.f32.vlgmr.msra.gmra.mxu1 %v2826_v50 }
  0x65   :  { %255 = vmatmul.mubr.f32.gmra.mxu0 %v2874_v5  ;;  %496 = vmatprep.subr.mxu0 %v2876_v6 }
  0x66   :  { %497 = vmatpush1.msra.mxu0 %v2879_v7  ;;  %260 = vmatprep.mubr.f32.mxu0 %v3739_v0 }
  0x67   :  { %498 = vmatprep.subr.mxu0 %v2882_v8  ;;  %2180 = vmatpush3.msra.mxu1 %v2915_v21 }
  0x68   :  { %499 = vmatpush1.msra.mxu0 %v2886_v9  ;;  %2181 = vmatprep.subr.mxu1 %v3739_v0 }
  0x69   :  { %261 = vmatmul.mubr.f32.gmra.mxu0 %v98_v11  ;;  %500 = vmatprep.subr.mxu0 %v2890_v12 }
  0x6a   :  { %501 = vmatpush1.msra.mxu0 %v2893_v13  ;;  %266 = vmatprep.mubr.f32.mxu0 %v3739_v0 }
  0x6b   :  { %502 = vmatprep.subr.mxu0 %v2896_v14  ;;  %2182 = vmatpush3.msra.mxu1 %v2932_v27 }
  0x6c   :  { %503 = vmatpush1.msra.mxu0 %v2899_v15  ;;  %2183 = vmatprep.subr.mxu1 %v3739_v0 }
  0x6d   :  { %267 = vmatmul.mubr.f32.gmra.mxu0 %v99_v16  ;;  %504 = vmatprep.subr.mxu0 %v2903_v17 }
  0x6e   :  { %505 = vmatpush1.msra.mxu0 %v2906_v18  ;;  %272 = vmatprep.mubr.f32.mxu0 %v3739_v0 }
  0x6f   :  { %506 = vmatprep.subr.mxu0 %v2909_v19  ;;  %2184 = vmatpush3.msra.mxu1 %v2938_v28 }
  0x70   :  { %507 = vmatpush1.msra.mxu0 %v2913_v20  ;;  %2170 = vmatprep.mubr.f32.mxu1 %v2842_v56 }
  0x71   :  { %273 = vmatmul.mubr.f32.gmra.mxu0 %v100_v22  ;;  %508 = vmatprep.subr.mxu0 %v2919_v23 }
  0x72   :  { %509 = vmatpush1.msra.mxu0 %v2922_v24  ;;  %544 = vmatprep.mubr.f32.mxu0 %v3739_v0 }
  0x73   :  { %510 = vmatprep.subr.mxu0 %v2926_v25  ;;  %2185 = vmatprep.subr.mxu1 %v3739_v0 }
  0x74   :  { %511 = vmatpush1.msra.mxu0 %v2930_v26  ;;  %2171 = vmatmul.mubr.f32.gmra.mxu1 %v2858_v62 }
  0x75   :  { %545 = vmatmul.mubr.f32.vlgmr.msra.gmra.mxu0 %v3739_v0  ;;  %2186 = vmatpush3.msra.mxu1 %v2944_v29 }
  0x76   :  { %2173 = vmatprep.mubr.f32.mxu1 %v2874_v5  ;;  %2187 = vmatprep.subr.mxu1 %v3739_v0 }
  0x77   :  { %648 = vmatprep.subr.mxu0 %v2814_v45  ;;  %2188 = vmatpush3.msra.mxu1 %v2949_v30 }
  0x78   :  { %649 = vmatpush1.msra.mxu0 %v2816_v46  ;;  %2189 = vmatprep.subr.mxu1 %v3739_v0 }
  0x79   :  { %2174 = vmatmul.mubr.f32.gmra.mxu1 %v98_v11  ;;  %650 = vmatprep.subr.mxu0 %v2818_v47 }
  0x7a   :  { %2190 = vmatpush3.msra.mxu1 %v2955_v31  ;;  %2176 = vmatprep.mubr.f32.mxu1 %v99_v16 }
  0x7b   :  { %2191 = vmatprep.subr.mxu1 %v3739_v0  ;;  %651 = vmatpush1.msra.mxu0 %v2822_v48 }
  0x7c   :  { %2192 = vmatpush3.msra.mxu1 %v2961_v32  ;;  %652 = vmatprep.subr.mxu0 %v2828_v51 }
  0x7d   :  { %2193 = vmatprep.subr.mxu1 %v3739_v0  ;;  %2177 = vmatmul.mubr.f32.gmra.mxu1 %v100_v22 }
  0x7e   :  { %2194 = vmatpush3.msra.mxu1 %v2965_v33  ;;  %2211 = vmatprep.mubr.msk.f32.mxu1 %vm2750_vm0, %v3739_v0 }
  0x7f   :  { %2195 = vmatprep.subr.mxu1 %v3739_v0  ;;  %653 = vmatpush1.msra.mxu0 %v2831_v52 }
  0x80   :  { %2196 = vmatpush3.msra.mxu1 %v2971_v34  ;;  %654 = vmatprep.subr.mxu0 %v2834_v53 }
  0x81   :  { %2197 = vmatprep.subr.mxu1 %v3739_v0  ;;  %655 = vmatpush1.msra.mxu0 %v2838_v54 }
  0x82   :  { %2198 = vmatpush3.msra.mxu1 %v2977_v35  ;;  %656 = vmatprep.subr.mxu0 %v2844_v57 }
  0x83   :  { %2199 = vmatprep.subr.mxu1 %v3739_v0  ;;  %657 = vmatpush1.msra.mxu0 %v2847_v58 }
  0x84   :  { %2200 = vmatpush3.msra.mxu1 %v2983_v36  ;;  %658 = vmatprep.subr.mxu0 %v2850_v59 }
  0x85   :  { %2201 = vmatprep.subr.mxu1 %v3739_v0  ;;  %659 = vmatpush1.msra.mxu0 %v2854_v60 }
  0x86   :  { %2202 = vmatpush3.msra.mxu1 %v2989_v37  ;;  %660 = vmatprep.subr.mxu0 %v2860_v63 }
  0x87   :  { %2203 = vmatprep.subr.mxu1 %v3739_v0  ;;  %661 = vmatpush1.msra.mxu0 %v2863_v1 }
  0x88   :  { %2204 = vmatpush3.msra.mxu1 %v2995_v38  ;;  %662 = vmatprep.subr.mxu0 %v2866_v2 }
  0x89   :  { %2205 = vmatprep.subr.mxu1 %v3739_v0  ;;  %663 = vmatpush1.msra.mxu0 %v2870_v3 }
  0x8a   :  { %2206 = vmatpush3.msra.mxu1 %v3001_v39  ;;  %664 = vmatprep.subr.mxu0 %v2876_v6 }
  0x8b   :  { %2207 = vmatprep.subr.mxu1 %v3739_v0  ;;  %665 = vmatpush1.msra.mxu0 %v2879_v7 }
  0x8c   :  { %2208 = vmatpush3.msra.mxu1 %v3007_v40  ;;  %666 = vmatprep.subr.mxu0 %v2882_v8 }
  0x8d   :  { %2209 = vmatprep.subr.mxu1 %v3739_v0  ;;  %667 = vmatpush1.msra.mxu0 %v2886_v9 }
  0x8e   :  { %2210 = vmatpush3.msra.mxu1 %v3013_v41  ;;  %668 = vmatprep.subr.mxu0 %v2890_v12 }
  0x8f   :  { %2212 = vmatmul.mubr.f32.vlgmr.msra.gmra.mxu1 %v3739_v0  ;;  %2214 = vmatprep.subr.mxu1 %v3739_v0 }
  0x90   :  { %2215 = vmatpush3.msra.mxu1 %v2915_v21  ;;  %669 = vmatpush1.msra.mxu0 %v2893_v13 }
  0x91   :  { %2216 = vmatprep.subr.mxu1 %v3739_v0  ;;  %670 = vmatprep.subr.mxu0 %v2896_v14 }
  0x92   :  { %2217 = vmatpush3.msra.mxu1 %v2932_v27  ;;  %671 = vmatpush1.msra.mxu0 %v2899_v15 }
  0x93   :  { %2218 = vmatprep.subr.mxu1 %v3739_v0  ;;  %672 = vmatprep.subr.mxu0 %v2903_v17 }
  0x94   :  { %2219 = vmatpush3.msra.mxu1 %v2938_v28  ;;  %673 = vmatpush1.msra.mxu0 %v2906_v18 }
  0x95   :  { %2220 = vmatprep.subr.mxu1 %v3739_v0  ;;  %674 = vmatprep.subr.mxu0 %v2909_v19 }
  0x96   :  { %2221 = vmatpush3.msra.mxu1 %v2944_v29  ;;  %675 = vmatpush1.msra.mxu0 %v2913_v20 }
  0x97   :  { %2222 = vmatprep.subr.mxu1 %v3739_v0  ;;  %676 = vmatprep.subr.mxu0 %v2919_v23 }
  0x98   :  { %2223 = vmatpush3.msra.mxu1 %v2949_v30  ;;  %677 = vmatpush1.msra.mxu0 %v2922_v24 }
  0x99   :  { %2224 = vmatprep.subr.mxu1 %v3739_v0  ;;  %678 = vmatprep.subr.mxu0 %v2926_v25 }
  0x9a   :  { %2225 = vmatpush3.msra.mxu1 %v2955_v31  ;;  %679 = vmatpush1.msra.mxu0 %v2930_v26 }
  0x9b   :  { %2226 = vmatprep.subr.mxu1 %v3739_v0  ;;  %712 = vmatprep.mubr.f32.mxu0 %v3739_v0 }
  0x9c   :  { %2227 = vmatpush3.msra.mxu1 %v2961_v32  ;;  %2246 = vmatprep.mubr.msk.f32.mxu1 %vm2750_vm0, %v3739_v0 }
  0x9d   :  { %2228 = vmatprep.subr.mxu1 %v3739_v0  ;;  %816 = vmatprep.subr.mxu0 %v2814_v45 }
  0x9e   :  { %2229 = vmatpush3.msra.mxu1 %v2965_v33 }
  0x9f   :  { %2230 = vmatprep.subr.mxu1 %v3739_v0 }
  0xa0   :  { %2231 = vmatpush3.msra.mxu1 %v2971_v34 }
  0xa1   :  { %2232 = vmatprep.subr.mxu1 %v3739_v0 }
  0xa2   :  { %2233 = vmatpush3.msra.mxu1 %v2977_v35 }
  0xa3   :  { %2234 = vmatprep.subr.mxu1 %v3739_v0 }
  0xa4   :  { %2235 = vmatpush3.msra.mxu1 %v2983_v36 }
  0xa5   :  { %2236 = vmatprep.subr.mxu1 %v3739_v0 }
  0xa6   :  { %2237 = vmatpush3.msra.mxu1 %v2989_v37 }
  0xa7   :  { %2238 = vmatprep.subr.mxu1 %v3739_v0 }
  0xa8   :  { %2239 = vmatpush3.msra.mxu1 %v2995_v38 }
  0xa9   :  { %2240 = vmatprep.subr.mxu1 %v3739_v0 }
  0xaa   :  { %2241 = vmatpush3.msra.mxu1 %v3001_v39 }
  0xab   :  { %2242 = vmatprep.subr.mxu1 %v3739_v0 }
  0xac   :  { %2243 = vmatpush3.msra.mxu1 %v3007_v40 }
  0xad   :  { %2244 = vmatprep.subr.mxu1 %v3739_v0 }
  0xae   :  { %2245 = vmatpush3.msra.mxu1 %v3013_v41 }
  0xaf   :  { %2249 = vmatprep.subr.mxu1 %v3739_v0 }
 0x115   :  { %v232_v50 = vpop.f32.mrf.mxu0 }
 0x117   :  { %v234_v56 = vpop.f32.mrf.mxu0 }
 0x119   :  { %v238_v62 = vpop.f32.mrf.mxu0 }
 0x11a   :  { %v3079_v5 = vadd.f32 %v238_v62, %v154_v61 }
 0x11b   :  { %v240_v10 = vpop.f32.mrf.mxu0 }
 0x11c   :  { %3776 = vst [vmem:[#allocation26_spill] sm:$0xff] %v3079_v5  ;;  %v3081_v11 = vadd.f32 %v240_v10, %v158_v4  ;;  %v161_v10 = vsub.s32 2, %v3072_v43 }
 0x11d   :  { %v244_v16 = vpop.f32.mrf.mxu0 }
 0x11e   :  { %3777 = vst [vmem:[#allocation27_spill] sm:$0xff] %v3081_v11  ;;  %v3083_v22 = vadd.f32 %v244_v16, %v154_v61 }
 0x11f   :  { %v246_v42 = vpop.f32.mrf.mxu0 }
 0x120   :  { %3778 = vst [vmem:[#allocation28_spill] sm:$0xff] %v3083_v22  ;;  %v3085_v0 = vadd.f32 %v246_v42, %v158_v4 }
 0x121   :  { %v250_v45 = vpop.f32.mrf.mxu0 }
 0x122   :  { %3779 = vst [vmem:[#allocation29_spill] sm:$0xff] %v3085_v0  ;;  %v3087_v41 = vadd.f32 %v250_v45, %v154_v61  ;;  %v162_v0 = vrot.slane %v149_v49, %v161_v10 }
 0x123   :  { %v252_v26 = vpop.f32.mrf.mxu0 }
 0x124   :  { %3780 = vst [vmem:[#allocation30_spill] sm:$0xff] %v3087_v41  ;;  %v3089_v25 = vadd.f32 %v252_v26, %v158_v4 }
 0x125   :  { %v256_v40 = vpop.f32.mrf.mxu0 }
 0x126   :  { %3781 = vst [vmem:[#allocation31_spill] sm:$0xff] %v3089_v25  ;;  %v3091_v24 = vadd.f32 %v256_v40, %v154_v61  ;;  %v456_v40 = vld [vmem:[%s3735_s4] sm:$0x7] }
 0x127   :  { %v258_v62 = vpop.f32.mrf.mxu0  ;;  %v3116_v23 = vrot.slane %v456_v40, %v157_v55 }
 0x128   :  { %3782 = vst [vmem:[#allocation32_spill] sm:$0xff] %v3091_v24  ;;  %v3093_v5 = vadd.f32 %v258_v62, %v158_v4  ;;  %v2169_v24 = vpop.f32.mrf.mxu1 }
 0x129   :  { %v262_v11 = vpop.f32.mrf.mxu0 }
 0x12a   :  { %3783 = vst [vmem:[#allocation33_spill] sm:$0xff] %v3093_v5  ;;  %v3096_v16 = vadd.f32 %v262_v11, %v154_v61  ;;  %v3107_v5 = vadd.f32 %v2169_v24, %v162_v0 }
 0x12b   :  { %v264_v22 = vpop.f32.mrf.mxu0 }
 0x12c   :  { %3784 = vst [vmem:[#allocation34_spill] sm:$0xff] %v3096_v16  ;;  %v3098_v42 = vadd.f32 %v264_v22, %v158_v4  ;;  %3788 = vst [vmem:[#allocation38_spill] sm:$0xff] %v3107_v5  ;;  %v3111_v16 = vrot.slane %v456_v40, %v153_v44 }
 0x12d   :  { %v268_v45 = vpop.f32.mrf.mxu0 }
 0x12e   :  { %3785 = vst [vmem:[#allocation35_spill] sm:$0xff] %v3098_v42  ;;  %v3100_v41 = vadd.f32 %v268_v45, %v154_v61  ;;  %3790 = vst [vmem:[#allocation40_spill] sm:$0xff] %v3111_v16  ;;  %v233_v42 = vadd.f32 %v232_v50, %v154_v61 }
 0x12f   :  { %v270_v26 = vpop.f32.mrf.mxu0 }
 0x130   :  { %3786 = vst [vmem:[#allocation36_spill] sm:$0xff] %v3100_v41  ;;  %v3105_v62 = vadd.f32 %v270_v26, %v158_v4  ;;  %v345_v41 = vpop.f32.mrf.mxu1 }
 0x131   :  { %v274_v43 = vpop.f32.mrf.mxu0 }
 0x132   :  { %3787 = vst [vmem:[#allocation37_spill] sm:$0xff] %v3105_v62  ;;  %v3109_v11 = vadd.f32 %v274_v43, %v154_v61 }
 0x133   :  { %v276_v22 = vpop.f32.mrf.mxu0 }
 0x134   :  { %3789 = vst [vmem:[#allocation39_spill] sm:$0xff] %v3109_v11  ;;  %v3113_v49 = vadd.f32 %v276_v22, %v158_v4  ;;  %v2172_v26 = vpop.f32.mrf.mxu1 }
 0x135   :  { %v546_v45 = vpop.f32.mrf.mxu0  ;;  %v3118_v24 = vadd.f32 %v2172_v26, %v162_v0 }
 0x136   :  { %3791 = vst [vmem:[#allocation41_spill] sm:$0xff] %v3113_v49  ;;  %v547_v25 = vadd.f32 %v546_v45, %v3111_v16  ;;  %v355_v5 = vpop.f32.mrf.mxu1  ;;  %v235_v49 = vadd.f32 %v234_v56, %v158_v4  ;;  %v3131_v56 = vrot.slane %v456_v40, %v161_v10  ;;  %v3800_v10 = vld [vmem:[#allocation23_spill] sm:$0xff]  ;;  %v3802_v40 = vld [vmem:[#allocation20_spill] sm:$0xff] }
 0x137   :  { %v548_v39 = vpop.f32.mrf.mxu0  ;;  %3792 = vst [vmem:[#allocation42_spill] sm:$0xff] %v3118_v24  ;;  %v3121_v11 = vadd.f32 %v355_v5, %v162_v0  ;;  %v3810_v24 = vld [vmem:[#allocation27_spill] sm:$0xff] }
 0x138   :  { %v621_v62 = vadd.f32 %v547_v25, %v233_v42  ;;  %v549_v44 = vadd.f32 %v548_v39, %v3116_v23 }
 0x139   :  { %3793 = vst [vmem:[#allocation43_spill] sm:$0xff] %v3121_v11  ;;  %v2175_v22 = vpop.f32.mrf.mxu1 }
 0x13a   :  { %v1941_v43 = vmul.f32 -1.442695, %v621_v62  ;;  %v3123_v20 = vadd.f32 %v2175_v22, %v162_v0  ;;  %v628_v61 = vadd.f32 %v549_v44, %v235_v49 }
 0x13b   :  { %v365_v50 = vpop.f32.mrf.mxu1 }
 0x13c   :  { %2505 = vpow2.f32 %v1941_v43  ;;  %3794 = vst [vmem:[#allocation44_spill] sm:$0xff] %v3123_v20  ;;  %v3125_v55 = vadd.f32 %v365_v50, %v162_v0  ;;  %v1942_v42 = vmul.f32 -1.442695, %v628_v61  ;;  %v346_v50 = vadd.f32 %v345_v41, %v162_v0  ;;  %v3799_v41 = vld [vmem:[#allocation18_spill] sm:$0xff] }
 0x13d   :  { %v2178_v45 = vpop.f32.mrf.mxu1 }
 0x13e   :  { %3795 = vst [vmem:[#allocation45_spill] sm:$0xff] %v3125_v55  ;;  %v3127_v16 = vadd.f32 %v2178_v45, %v162_v0  ;;  %2507 = vpow2.f32 %v1942_v42 }
 0x13f   :  { %v375_v25 = vpop.f32.mrf.mxu1 }
 0x140   :  { %3796 = vst [vmem:[#allocation46_spill] sm:$0xff] %v3127_v16  ;;  %v3129_v26 = vadd.f32 %v375_v25, %v162_v0  ;;  %v3798_v0 = vmov 0.0  }
 0x142   :  { %3797 = vst [vmem:[#allocation47_spill] sm:$0xff] %v3129_v26 }
 0x149   :  { %v2506_v39 = vpop.eup %2505 }
 0x14a   :  { %v625_v5 = vadd.f32 1.0, %v2506_v39 }
 0x14b   :  { %v2508_v4 = vpop.eup %2507 }
 0x14c   :  { %2509 = vrcp.f32 %v625_v5  ;;  %v632_v22 = vadd.f32 1.0, %v2508_v4  ;;  %v3805_v4 = vld [vmem:[#allocation22_spill] sm:$0xff] }
 0x14e   :  { %2511 = vrcp.f32 %v632_v22  ;;  %v3807_v22 = vld [vmem:[#allocation17_spill] sm:$0xff] }
 0x14f   :  { %v617_v62 = vpop.f32.mrf.mxu1 }
 0x150   :  { %v618_v49 = vadd.f32 %v617_v62, %v3131_v56  ;;  %v3804_v62 = vld [vmem:[#allocation21_spill] sm:$0xff] }
 0x151   :  { %v2213_v43 = vpop.f32.mrf.mxu1 }
 0x152   :  { %v3806_v43 = vld [vmem:[#allocation25_spill] sm:$0xff] }
 0x159   :  { %v2510_v44 = vpop.eup %2509 }
 0x15a   :  { %v635_v45 = vmul.f32 %v2510_v44, %v618_v49 }
 0x15b   :  { %v2512_v61 = vpop.eup %2511 }
 0x15c   :  { %v636_v16 = vadd.f32 %v635_v45, %v346_v50  ;;  %v638_v25 = vsub.f32 1.0, %v2512_v61  ;;  %v640_v39 = vmul.f32 0.0, %v2512_v61  ;;  %v3808_v50 = vld [vmem:[#allocation40_spill] sm:$0xff] }
 0x15e   :  { %2513 = vtanh.f32 %v636_v16  ;;  %v3801_v16 = vld [vmem:[#allocation19_spill] sm:$0xff] }
 0x16b   :  { %v2514_v42 = vpop.eup %2513 }
 0x16c   :  { %v639_v26 = vmul.f32 %v2514_v42, %v638_v25  ;;  %v3809_v42 = vld [vmem:[#allocation26_spill] sm:$0xff] }
 0x16e   :  { %v3134_v5 = vadd.f32 %v640_v39, %v639_v26  ;;  %v3803_v26 = vld [vmem:[#allocation24_spill] sm:$0xff] }
 0x170   :  { %713 = vmatmul.mubr.f32.vlgmr.msra.gmra.mxu0 %v3134_v5  ;;  %2247 = vmatmul.mubr.f32.vlgmr.msra.gmra.mxu1 %v3134_v5 }
 0x171   :  { %817 = vmatpush1.msra.mxu0 %v2816_v46  ;;  %2250 = vmatpush3.msra.mxu1 %v2915_v21 }
 0x172   :  { %818 = vmatprep.subr.mxu0 %v2818_v47  ;;  %2251 = vmatprep.subr.mxu1 %v3798_v0 }
 0x173   :  { %819 = vmatpush1.msra.mxu0 %v2822_v48  ;;  %2252 = vmatpush3.msra.mxu1 %v2932_v27 }
 0x174   :  { %820 = vmatprep.subr.mxu0 %v2828_v51  ;;  %2253 = vmatprep.subr.mxu1 %v3798_v0 }
 0x175   :  { %821 = vmatpush1.msra.mxu0 %v2831_v52  ;;  %2254 = vmatpush3.msra.mxu1 %v2938_v28 }
 0x176   :  { %822 = vmatprep.subr.mxu0 %v2834_v53  ;;  %2255 = vmatprep.subr.mxu1 %v3798_v0 }
 0x177   :  { %823 = vmatpush1.msra.mxu0 %v2838_v54  ;;  %2256 = vmatpush3.msra.mxu1 %v2944_v29 }
 0x178   :  { %824 = vmatprep.subr.mxu0 %v2844_v57  ;;  %2257 = vmatprep.subr.mxu1 %v3798_v0 }
 0x179   :  { %825 = vmatpush1.msra.mxu0 %v2847_v58  ;;  %2258 = vmatpush3.msra.mxu1 %v2949_v30 }
 0x17a   :  { %826 = vmatprep.subr.mxu0 %v2850_v59  ;;  %2259 = vmatprep.subr.mxu1 %v3798_v0 }
 0x17b   :  { %827 = vmatpush1.msra.mxu0 %v2854_v60  ;;  %2260 = vmatpush3.msra.mxu1 %v2955_v31 }
 0x17c   :  { %828 = vmatprep.subr.mxu0 %v2860_v63  ;;  %2261 = vmatprep.subr.mxu1 %v3798_v0 }
 0x17d   :  { %829 = vmatpush1.msra.mxu0 %v2863_v1  ;;  %2262 = vmatpush3.msra.mxu1 %v2961_v32 }
 0x17e   :  { %830 = vmatprep.subr.mxu0 %v2866_v2  ;;  %2263 = vmatprep.subr.mxu1 %v3798_v0 }
 0x17f   :  { %831 = vmatpush1.msra.mxu0 %v2870_v3  ;;  %2264 = vmatpush3.msra.mxu1 %v2965_v33 }
 0x180   :  { %832 = vmatprep.subr.mxu0 %v2876_v6  ;;  %2265 = vmatprep.subr.mxu1 %v3798_v0 }
 0x181   :  { %833 = vmatpush1.msra.mxu0 %v2879_v7  ;;  %2266 = vmatpush3.msra.mxu1 %v2971_v34 }
 0x182   :  { %834 = vmatprep.subr.mxu0 %v2882_v8  ;;  %2267 = vmatprep.subr.mxu1 %v3798_v0 }
 0x183   :  { %835 = vmatpush1.msra.mxu0 %v2886_v9  ;;  %2268 = vmatpush3.msra.mxu1 %v2977_v35 }
 0x184   :  { %836 = vmatprep.subr.mxu0 %v2890_v12  ;;  %2269 = vmatprep.subr.mxu1 %v3798_v0 }
 0x185   :  { %837 = vmatpush1.msra.mxu0 %v2893_v13  ;;  %2270 = vmatpush3.msra.mxu1 %v2983_v36 }
 0x186   :  { %838 = vmatprep.subr.mxu0 %v2896_v14  ;;  %2271 = vmatprep.subr.mxu1 %v3798_v0 }
 0x187   :  { %839 = vmatpush1.msra.mxu0 %v2899_v15  ;;  %2272 = vmatpush3.msra.mxu1 %v2989_v37 }
 0x188   :  { %840 = vmatprep.subr.mxu0 %v2903_v17  ;;  %2273 = vmatprep.subr.mxu1 %v3798_v0 }
 0x189   :  { %841 = vmatpush1.msra.mxu0 %v2906_v18  ;;  %2274 = vmatpush3.msra.mxu1 %v2995_v38 }
 0x18a   :  { %842 = vmatprep.subr.mxu0 %v2909_v19  ;;  %2275 = vmatprep.subr.mxu1 %v3798_v0 }
 0x18b   :  { %843 = vmatpush1.msra.mxu0 %v3799_v41  ;;  %2276 = vmatpush3.msra.mxu1 %v3800_v10 }
 0x18c   :  { %844 = vmatprep.subr.mxu0 %v3801_v16  ;;  %2277 = vmatprep.subr.mxu1 %v3798_v0 }
 0x18d   :  { %845 = vmatpush1.msra.mxu0 %v3802_v40  ;;  %2278 = vmatpush3.msra.mxu1 %v3803_v26 }
 0x18e   :  { %846 = vmatprep.subr.mxu0 %v3804_v62  ;;  %2279 = vmatprep.subr.mxu1 %v3798_v0 }
 0x18f   :  { %847 = vmatpush1.msra.mxu0 %v3805_v4  ;;  %880 = vmatprep.mubr.f32.mxu0 %v3798_v0 }
 0x190   :  { %2280 = vmatpush3.msra.mxu1 %v3806_v43  ;;  %2281 = vmatprep.mubr.msk.f32.mxu1 %vm2750_vm0, %v3798_v0 }
 0x191   :  { %984 = vmatprep.subr.mxu0 %v3807_v22  ;;  %2284 = vmatprep.subr.mxu1 %v3798_v0 }
 0x230   :  { %v714_v49 = vpop.f32.mrf.mxu0  ;;  %v785_v44 = vpop.f32.mrf.mxu1 }
 0x231   :  { %v715_v45 = vadd.f32 %v714_v49, %v3808_v50  ;;  %v786_v40 = vadd.f32 %v785_v44, %v3131_v56 }
 0x232   :  { %v716_v61 = vpop.f32.mrf.mxu0  ;;  %v2248_v25 = vpop.f32.mrf.mxu1 }
 0x233   :  { %v789_v39 = vadd.f32 %v715_v45, %v3809_v42  ;;  %v717_v55 = vadd.f32 %v716_v61, %v3116_v23  ;;  %v3811_v25 = vld [vmem:[#allocation38_spill] sm:$0xff] }
 0x235   :  { %v1943_v20 = vmul.f32 -1.442695, %v789_v39  ;;  %v796_v11 = vadd.f32 %v717_v55, %v3810_v24  ;;  %v3817_v55 = vld [vmem:[#allocation17_spill] sm:$0xff] }
 0x237   :  { %2515 = vpow2.f32 %v1943_v20  ;;  %v1944_v43 = vmul.f32 -1.442695, %v796_v11 }
 0x239   :  { %2517 = vpow2.f32 %v1944_v43 }
 0x244   :  { %v2516_v4 = vpop.eup %2515 }
 0x245   :  { %v793_v22 = vadd.f32 1.0, %v2516_v4 }
 0x246   :  { %v2518_v62 = vpop.eup %2517 }
 0x247   :  { %2519 = vrcp.f32 %v793_v22  ;;  %v800_v26 = vadd.f32 1.0, %v2518_v62  ;;  %v3819_v22 = vld [vmem:[#allocation28_spill] sm:$0xff] }
 0x249   :  { %2521 = vrcp.f32 %v800_v26  ;;  %v3818_v26 = vld [vmem:[#allocation40_spill] sm:$0xff] }
 0x254   :  { %v2520_v49 = vpop.eup %2519 }
 0x255   :  { %v803_v50 = vmul.f32 %v2520_v49, %v786_v40 }
 0x256   :  { %v2522_v42 = vpop.eup %2521 }
 0x257   :  { %v804_v45 = vadd.f32 %v803_v50, %v3811_v25  ;;  %v806_v61 = vsub.f32 1.0, %v2522_v42  ;;  %v808_v11 = vmul.f32 %v2522_v42, %v3134_v5  ;;  %v3820_v25 = vld [vmem:[#allocation29_spill] sm:$0xff] }
 0x259   :  { %2523 = vtanh.f32 %v804_v45 }
 0x266   :  { %v2524_v20 = vpop.eup %2523 }
 0x267   :  { %v807_v39 = vmul.f32 %v2524_v20, %v806_v61 }
 0x269   :  { %v3212_v24 = vadd.f32 %v808_v11, %v807_v39 }
 0x26b   :  { %881 = vmatmul.mubr.f32.vlgmr.msra.gmra.mxu0 %v3212_v24  ;;  %2282 = vmatmul.mubr.f32.vlgmr.msra.gmra.mxu1 %v3212_v24 }
 0x26c   :  { %985 = vmatpush1.msra.mxu0 %v2816_v46  ;;  %2285 = vmatpush3.msra.mxu1 %v2915_v21  ;;  %v3812_v46 = vld [vmem:[#allocation20_spill] sm:$0xff] }
 0x26d   :  { %986 = vmatprep.subr.mxu0 %v2818_v47  ;;  %2286 = vmatprep.subr.mxu1 %v3798_v0  ;;  %v3813_v47 = vld [vmem:[#allocation24_spill] sm:$0xff] }
 0x26e   :  { %987 = vmatpush1.msra.mxu0 %v2822_v48  ;;  %2287 = vmatpush3.msra.mxu1 %v2932_v27  ;;  %v3814_v48 = vld [vmem:[#allocation21_spill] sm:$0xff] }
 0x26f   :  { %988 = vmatprep.subr.mxu0 %v2828_v51  ;;  %2288 = vmatprep.subr.mxu1 %v3798_v0  ;;  %v3815_v51 = vld [vmem:[#allocation22_spill] sm:$0xff] }
 0x270   :  { %989 = vmatpush1.msra.mxu0 %v2831_v52  ;;  %2289 = vmatpush3.msra.mxu1 %v2938_v28  ;;  %v3816_v52 = vld [vmem:[#allocation25_spill] sm:$0xff] }
 0x271   :  { %990 = vmatprep.subr.mxu0 %v2834_v53  ;;  %2290 = vmatprep.subr.mxu1 %v3798_v0 }
 0x272   :  { %991 = vmatpush1.msra.mxu0 %v2838_v54  ;;  %2291 = vmatpush3.msra.mxu1 %v2944_v29 }
 0x273   :  { %992 = vmatprep.subr.mxu0 %v2844_v57  ;;  %2292 = vmatprep.subr.mxu1 %v3798_v0 }
 0x274   :  { %993 = vmatpush1.msra.mxu0 %v2847_v58  ;;  %2293 = vmatpush3.msra.mxu1 %v2949_v30 }
 0x275   :  { %994 = vmatprep.subr.mxu0 %v2850_v59  ;;  %2294 = vmatprep.subr.mxu1 %v3798_v0 }
 0x276   :  { %995 = vmatpush1.msra.mxu0 %v2854_v60  ;;  %2295 = vmatpush3.msra.mxu1 %v2955_v31 }
 0x277   :  { %996 = vmatprep.subr.mxu0 %v2860_v63  ;;  %2296 = vmatprep.subr.mxu1 %v3798_v0 }
 0x278   :  { %997 = vmatpush1.msra.mxu0 %v2863_v1  ;;  %2297 = vmatpush3.msra.mxu1 %v2961_v32 }
 0x279   :  { %998 = vmatprep.subr.mxu0 %v2866_v2  ;;  %2298 = vmatprep.subr.mxu1 %v3798_v0 }
 0x27a   :  { %999 = vmatpush1.msra.mxu0 %v2870_v3  ;;  %2299 = vmatpush3.msra.mxu1 %v2965_v33 }
 0x27b   :  { %1000 = vmatprep.subr.mxu0 %v2876_v6  ;;  %2300 = vmatprep.subr.mxu1 %v3798_v0 }
 0x27c   :  { %1001 = vmatpush1.msra.mxu0 %v2879_v7  ;;  %2301 = vmatpush3.msra.mxu1 %v2971_v34 }
 0x27d   :  { %1002 = vmatprep.subr.mxu0 %v2882_v8  ;;  %2302 = vmatprep.subr.mxu1 %v3798_v0 }
 0x27e   :  { %1003 = vmatpush1.msra.mxu0 %v2886_v9  ;;  %2303 = vmatpush3.msra.mxu1 %v2977_v35 }
 0x27f   :  { %1004 = vmatprep.subr.mxu0 %v2890_v12  ;;  %2304 = vmatprep.subr.mxu1 %v3798_v0 }
 0x280   :  { %1005 = vmatpush1.msra.mxu0 %v2893_v13  ;;  %2305 = vmatpush3.msra.mxu1 %v2983_v36 }
 0x281   :  { %1006 = vmatprep.subr.mxu0 %v2896_v14  ;;  %2306 = vmatprep.subr.mxu1 %v3798_v0 }
 0x282   :  { %1007 = vmatpush1.msra.mxu0 %v2899_v15  ;;  %2307 = vmatpush3.msra.mxu1 %v2989_v37 }
 0x283   :  { %1008 = vmatprep.subr.mxu0 %v2903_v17  ;;  %2308 = vmatprep.subr.mxu1 %v3798_v0 }
 0x284   :  { %1009 = vmatpush1.msra.mxu0 %v2906_v18  ;;  %2309 = vmatpush3.msra.mxu1 %v2995_v38 }
 0x285   :  { %1010 = vmatprep.subr.mxu0 %v2909_v19  ;;  %2310 = vmatprep.subr.mxu1 %v3798_v0 }
 0x286   :  { %1011 = vmatpush1.msra.mxu0 %v3799_v41  ;;  %2311 = vmatpush3.msra.mxu1 %v3800_v10 }
 0x287   :  { %1012 = vmatprep.subr.mxu0 %v3801_v16  ;;  %2312 = vmatprep.subr.mxu1 %v3798_v0 }
 0x288   :  { %1013 = vmatpush1.msra.mxu0 %v3812_v46  ;;  %2313 = vmatpush3.msra.mxu1 %v3813_v47 }
 0x289   :  { %1014 = vmatprep.subr.mxu0 %v3814_v48  ;;  %2314 = vmatprep.subr.mxu1 %v3798_v0 }
 0x28a   :  { %1015 = vmatpush1.msra.mxu0 %v3815_v51  ;;  %1048 = vmatprep.mubr.f32.mxu0 %v3798_v0 }
 0x28b   :  { %2315 = vmatpush3.msra.mxu1 %v3816_v52  ;;  %2316 = vmatprep.mubr.msk.f32.mxu1 %vm2750_vm0, %v3798_v0 }
 0x28c   :  { %1152 = vmatprep.subr.mxu0 %v3817_v55  ;;  %2319 = vmatprep.subr.mxu1 %v3798_v0 }
 0x32b   :  { %v882_v5 = vpop.f32.mrf.mxu0  ;;  %v953_v40 = vpop.f32.mrf.mxu1 }
 0x32c   :  { %v883_v62 = vadd.f32 %v882_v5, %v3818_v26  ;;  %v954_v55 = vadd.f32 %v953_v40, %v3131_v56  ;;  %v3298_v40 = vld [vmem:[#allocation9 + $0x158] sm:$0xff] }
 0x32d   :  { %v884_v4 = vpop.f32.mrf.mxu0  ;;  %v2283_v43 = vpop.f32.mrf.mxu1 }
 0x32e   :  { %v957_v44 = vadd.f32 %v883_v62, %v3819_v22  ;;  %v885_v49 = vadd.f32 %v884_v4, %v3116_v23  ;;  %v3821_v43 = vld [vmem:[#allocation43_spill] sm:$0xff] }
 0x330   :  { %v1945_v50 = vmul.f32 -1.442695, %v957_v44  ;;  %v964_v45 = vadd.f32 %v885_v49, %v3820_v25 }
 0x332   :  { %2525 = vpow2.f32 %v1945_v50  ;;  %v1946_v42 = vmul.f32 -1.442695, %v964_v45  ;;  %v3294_v45 = vld [vmem:[#allocation9 + $0x168] sm:$0xff] }
 0x334   :  { %2527 = vpow2.f32 %v1946_v42  ;;  %v3310_v42 = vld [vmem:[#allocation9 + $0x138] sm:$0xff] }
 0x33f   :  { %v2526_v61 = vpop.eup %2525 }
 0x340   :  { %v961_v20 = vadd.f32 1.0, %v2526_v61  ;;  %v3400_v61 = vld [vmem:[#allocation9 + $0x128] sm:$0xff] }
 0x341   :  { %v2528_v39 = vpop.eup %2527 }
 0x342   :  { %2529 = vrcp.f32 %v961_v20  ;;  %v968_v11 = vadd.f32 1.0, %v2528_v39  ;;  %v3404_v20 = vld [vmem:[#allocation9 + $0x120] sm:$0xff]  ;;  %v3407_v39 = vld [vmem:[#allocation9 + $0x130] sm:$0xff] }
 0x344   :  { %2531 = vrcp.f32 %v968_v11  ;;  %v3410_v11 = vld [vmem:[#allocation9 + $0x110] sm:$0xff] }
 0x34f   :  { %v2530_v5 = vpop.eup %2529 }
 0x350   :  { %v971_v26 = vmul.f32 %v2530_v5, %v954_v55  ;;  %v3414_v55 = vld [vmem:[#allocation9 + $0x108] sm:$0xff]  ;;  %v3417_v5 = vld [vmem:[#allocation9 + $0x118] sm:$0xff] }
 0x351   :  { %v2532_v22 = vpop.eup %2531 }
 0x352   :  { %v972_v62 = vadd.f32 %v971_v26, %v3821_v43  ;;  %v974_v4 = vsub.f32 1.0, %v2532_v22  ;;  %v976_v49 = vmul.f32 %v2532_v22, %v3212_v24  ;;  %v3302_v26 = vld [vmem:[#allocation9 + $0x150] sm:$0xff]  ;;  %v3306_v24 = vld [vmem:[#allocation9 + $0x140] sm:$0xff]  ;;  %v3420_v43 = vld [vmem:[#allocation9 + $0xf8] sm:$0xff] }
 0x353   :  { %v3427_v22 = vld [vmem:[#allocation9 + $0x100] sm:$0xff] }
 0x354   :  { %2533 = vtanh.f32 %v972_v62  ;;  %v3424_v62 = vld [vmem:[#allocation9 + $0xf0] sm:$0xff] }
 0x361   :  { %v2534_v44 = vpop.eup %2533 }
 0x362   :  { %v975_v50 = vmul.f32 %v2534_v44, %v974_v4  ;;  %v3430_v4 = vld [vmem:[#allocation9 + $0xe0] sm:$0xff]  ;;  %v3434_v44 = vld [vmem:[#allocation9 + $0xd8] sm:$0xff] }
 0x364   :  { %v3290_v25 = vadd.f32 %v976_v49, %v975_v50  ;;  %v3438_v50 = vld [vmem:[#allocation9 + $0xc8] sm:$0xff]  ;;  %v3442_v49 = vld [vmem:[#allocation9 + $0xc0] sm:$0xff] }
 0x366   :  { %1049 = vmatmul.mubr.f32.vlgmr.msra.gmra.mxu0 %v3290_v25  ;;  %2317 = vmatmul.mubr.f32.vlgmr.msra.gmra.mxu1 %v3290_v25 }
 0x367   :  { %1153 = vmatpush1.msra.mxu0 %v3294_v45  ;;  %2320 = vmatpush3.msra.mxu1 %v2915_v21  ;;  %v3825_v21 = vld [vmem:[#allocation42_spill] sm:$0xff] }
 0x368   :  { %1154 = vmatprep.subr.mxu0 %v3298_v40  ;;  %2321 = vmatprep.subr.mxu1 %v3798_v0 }
 0x369   :  { %1155 = vmatpush1.msra.mxu0 %v3302_v26  ;;  %2322 = vmatpush3.msra.mxu1 %v2932_v27 }
 0x36a   :  { %1156 = vmatprep.subr.mxu0 %v3306_v24  ;;  %2323 = vmatprep.subr.mxu1 %v3798_v0 }
 0x36b   :  { %1157 = vmatpush1.msra.mxu0 %v3310_v42  ;;  %2324 = vmatpush3.msra.mxu1 %v2938_v28 }
 0x36c   :  { %1158 = vmatprep.subr.mxu0 %v2834_v53  ;;  %2325 = vmatprep.subr.mxu1 %v3798_v0  ;;  %v3369_v53 = vld [vmem:[#allocation9 + $0x170] sm:$0xff] }
 0x36d   :  { %1159 = vmatpush1.msra.mxu0 %v2838_v54  ;;  %2326 = vmatpush3.msra.mxu1 %v2944_v29 }
 0x36e   :  { %1160 = vmatprep.subr.mxu0 %v2844_v57  ;;  %2327 = vmatprep.subr.mxu1 %v3798_v0 }
 0x36f   :  { %1161 = vmatpush1.msra.mxu0 %v2847_v58  ;;  %2328 = vmatpush3.msra.mxu1 %v2949_v30  ;;  %v3822_v58 = vld [vmem:[#allocation40_spill] sm:$0xff] }
 0x370   :  { %1162 = vmatprep.subr.mxu0 %v2850_v59  ;;  %2329 = vmatprep.subr.mxu1 %v3798_v0 }
 0x371   :  { %1163 = vmatpush1.msra.mxu0 %v2854_v60  ;;  %2330 = vmatpush3.msra.mxu1 %v2955_v31 }
 0x372   :  { %1164 = vmatprep.subr.mxu0 %v2860_v63  ;;  %2331 = vmatprep.subr.mxu1 %v3798_v0 }
 0x373   :  { %1165 = vmatpush1.msra.mxu0 %v2863_v1  ;;  %2332 = vmatpush3.msra.mxu1 %v2961_v32  ;;  %v3823_v1 = vld [vmem:[#allocation30_spill] sm:$0xff] }
 0x374   :  { %1166 = vmatprep.subr.mxu0 %v2866_v2  ;;  %2333 = vmatprep.subr.mxu1 %v3798_v0 }
 0x375   :  { %1167 = vmatpush1.msra.mxu0 %v2870_v3  ;;  %2334 = vmatpush3.msra.mxu1 %v2965_v33 }
 0x376   :  { %1168 = vmatprep.subr.mxu0 %v2876_v6  ;;  %2335 = vmatprep.subr.mxu1 %v3798_v0 }
 0x377   :  { %1169 = vmatpush1.msra.mxu0 %v2879_v7  ;;  %2336 = vmatpush3.msra.mxu1 %v2971_v34  ;;  %v3824_v7 = vld [vmem:[#allocation31_spill] sm:$0xff] }
 0x378   :  { %1170 = vmatprep.subr.mxu0 %v2882_v8  ;;  %2337 = vmatprep.subr.mxu1 %v3798_v0 }
 0x379   :  { %1171 = vmatpush1.msra.mxu0 %v2886_v9  ;;  %2338 = vmatpush3.msra.mxu1 %v2977_v35 }
 0x37a   :  { %1172 = vmatprep.subr.mxu0 %v2890_v12  ;;  %2339 = vmatprep.subr.mxu1 %v3798_v0 }
 0x37b   :  { %1173 = vmatpush1.msra.mxu0 %v2893_v13  ;;  %2340 = vmatpush3.msra.mxu1 %v2983_v36 }
 0x37c   :  { %1174 = vmatprep.subr.mxu0 %v2896_v14  ;;  %2341 = vmatprep.subr.mxu1 %v3798_v0 }
 0x37d   :  { %1175 = vmatpush1.msra.mxu0 %v2899_v15  ;;  %2342 = vmatpush3.msra.mxu1 %v2989_v37 }
 0x37e   :  { %1176 = vmatprep.subr.mxu0 %v2903_v17  ;;  %2343 = vmatprep.subr.mxu1 %v3798_v0 }
 0x37f   :  { %1177 = vmatpush1.msra.mxu0 %v2906_v18  ;;  %2344 = vmatpush3.msra.mxu1 %v2995_v38 }
 0x380   :  { %1178 = vmatprep.subr.mxu0 %v2909_v19  ;;  %2345 = vmatprep.subr.mxu1 %v3798_v0 }
 0x381   :  { %1179 = vmatpush1.msra.mxu0 %v3799_v41  ;;  %2346 = vmatpush3.msra.mxu1 %v3800_v10 }
 0x382   :  { %1180 = vmatprep.subr.mxu0 %v3801_v16  ;;  %2347 = vmatprep.subr.mxu1 %v3798_v0 }
 0x383   :  { %1181 = vmatpush1.msra.mxu0 %v3812_v46  ;;  %2348 = vmatpush3.msra.mxu1 %v3813_v47  ;;  %v3385_v46 = vld [vmem:[#allocation9 + $0x178] sm:$0xff] }
 0x384   :  { %1182 = vmatprep.subr.mxu0 %v3814_v48  ;;  %2349 = vmatprep.subr.mxu1 %v3798_v0  ;;  %v3391_v48 = vld [vmem:[#allocation9 + $0x160] sm:$0xff] }
 0x385   :  { %1183 = vmatpush1.msra.mxu0 %v3815_v51  ;;  %1216 = vmatprep.mubr.f32.mxu0 %v3798_v0  ;;  %v3397_v51 = vld [vmem:[#allocation9 + $0x148] sm:$0xff] }
 0x386   :  { %2350 = vmatpush3.msra.mxu1 %v3816_v52  ;;  %2351 = vmatprep.mubr.msk.f32.mxu1 %vm2750_vm0, %v3798_v0 }
 0x387   :  { %1320 = vmatprep.subr.mxu0 %v3369_v53  ;;  %2354 = vmatprep.subr.mxu1 %v3798_v0 }
 0x426   :  { %v1050_v54 = vpop.f32.mrf.mxu0  ;;  %v1121_v57 = vpop.f32.mrf.mxu1 }
 0x427   :  { %v1051_v59 = vadd.f32 %v1050_v54, %v3822_v58  ;;  %v1122_v17 = vadd.f32 %v1121_v57, %v3131_v56  ;;  %v3450_v54 = vld [vmem:[#allocation9 + $0xa8] sm:$0xff]  ;;  %v3458_v57 = vld [vmem:[#allocation9 + $0x90] sm:$0xff] }
 0x428   :  { %v1052_v60 = vpop.f32.mrf.mxu0  ;;  %v2318_v63 = vpop.f32.mrf.mxu1 }
 0x429   :  { %v1125_v2 = vadd.f32 %v1051_v59, %v3823_v1  ;;  %v1053_v6 = vadd.f32 %v1052_v60, %v3116_v23  ;;  %v3466_v59 = vld [vmem:[#allocation9 + $0x78] sm:$0xff]  ;;  %v3474_v60 = vld [vmem:[#allocation9 + $0x60] sm:$0xff]  ;;  %v3482_v63 = vld [vmem:[#allocation9 + $0x48] sm:$0xff] }
 0x42a   :  { %v3490_v1 = vld [vmem:[#allocation9 + $0x30] sm:$0xff] }
 0x42b   :  { %v1947_v3 = vmul.f32 -1.442695, %v1125_v2  ;;  %v1132_v8 = vadd.f32 %v1053_v6, %v3824_v7  ;;  %v3498_v2 = vld [vmem:[#allocation9 + $0x18] sm:$0xff] }
 0x42c   :  { %3826 = vst [vmem:[#allocation18_spill] sm:$0xff] %v3498_v2 }
 0x42d   :  { %2535 = vpow2.f32 %v1947_v3  ;;  %v1948_v9 = vmul.f32 -1.442695, %v1132_v8  ;;  %v3506_v3 = vld [vmem:[#allocation9] sm:$0xff] }
 0x42e   :  { %3828 = vst [vmem:[#allocation19_spill] sm:$0xff] %v3506_v3 }
 0x42f   :  { %2537 = vpow2.f32 %v1948_v9  ;;  %v3829_v9 = vld [vmem:[#allocation32_spill] sm:$0xff] }
 0x43a   :  { %v2536_v12 = vpop.eup %2535 }
 0x43b   :  { %v1129_v13 = vadd.f32 1.0, %v2536_v12 }
 0x43c   :  { %v2538_v14 = vpop.eup %2537 }
 0x43d   :  { %2539 = vrcp.f32 %v1129_v13  ;;  %v1136_v15 = vadd.f32 1.0, %v2538_v14 }
 0x43f   :  { %2541 = vrcp.f32 %v1136_v15 }
 0x44a   :  { %v2540_v18 = vpop.eup %2539 }
 0x44b   :  { %v1139_v19 = vmul.f32 %v2540_v18, %v1122_v17 }
 0x44c   :  { %v2542_v28 = vpop.eup %2541 }
 0x44d   :  { %v1140_v27 = vadd.f32 %v1139_v19, %v3825_v21  ;;  %v1142_v29 = vsub.f32 1.0, %v2542_v28  ;;  %v1144_v41 = vmul.f32 %v2542_v28, %v3290_v25  ;;  %v3446_v25 = vld [vmem:[#allocation9 + $0xb0] sm:$0xff] }
 0x44f   :  { %2543 = vtanh.f32 %v1140_v27 }
 0x45c   :  { %v2544_v30 = vpop.eup %2543 }
 0x45d   :  { %v1143_v31 = vmul.f32 %v2544_v30, %v1142_v29 }
 0x45f   :  { %v3380_v16 = vadd.f32 %v1144_v41, %v1143_v31  ;;  %v3831_v31 = vld [vmem:[#allocation45_spill] sm:$0xff] }
 0x461   :  { %1217 = vmatmul.mubr.f32.vlgmr.msra.gmra.mxu0 %v3380_v16  ;;  %2352 = vmatmul.mubr.f32.vlgmr.msra.gmra.mxu1 %v3380_v16 }
 0x462   :  { %1321 = vmatpush1.msra.mxu0 %v3294_v45  ;;  %2355 = vmatpush3.msra.mxu1 %v3385_v46 }
 0x463   :  { %1322 = vmatprep.subr.mxu0 %v3298_v40  ;;  %2356 = vmatprep.subr.mxu1 %v3798_v0 }
 0x464   :  { %1323 = vmatpush1.msra.mxu0 %v3302_v26  ;;  %2357 = vmatpush3.msra.mxu1 %v3391_v48 }
 0x465   :  { %1324 = vmatprep.subr.mxu0 %v3306_v24  ;;  %2358 = vmatprep.subr.mxu1 %v3798_v0 }
 0x466   :  { %1325 = vmatpush1.msra.mxu0 %v3310_v42  ;;  %2359 = vmatpush3.msra.mxu1 %v3397_v51 }
 0x467   :  { %1326 = vmatprep.subr.mxu0 %v3400_v61  ;;  %2360 = vmatprep.subr.mxu1 %v3798_v0 }
 0x468   :  { %1327 = vmatpush1.msra.mxu0 %v3404_v20  ;;  %2361 = vmatpush3.msra.mxu1 %v3407_v39 }
 0x469   :  { %1328 = vmatprep.subr.mxu0 %v3410_v11  ;;  %2362 = vmatprep.subr.mxu1 %v3798_v0 }
 0x46a   :  { %1329 = vmatpush1.msra.mxu0 %v3414_v55  ;;  %2363 = vmatpush3.msra.mxu1 %v3417_v5 }
 0x46b   :  { %1330 = vmatprep.subr.mxu0 %v3420_v43  ;;  %2364 = vmatprep.subr.mxu1 %v3798_v0 }
 0x46c   :  { %1331 = vmatpush1.msra.mxu0 %v3424_v62  ;;  %2365 = vmatpush3.msra.mxu1 %v3427_v22 }
 0x46d   :  { %1332 = vmatprep.subr.mxu0 %v3430_v4  ;;  %2366 = vmatprep.subr.mxu1 %v3798_v0 }
 0x46e   :  { %1333 = vmatpush1.msra.mxu0 %v3434_v44  ;;  %2367 = vmatpush3.msra.mxu1 %v2961_v32  ;;  %v3454_v32 = vld [vmem:[#allocation9 + $0x98] sm:$0xff] }
 0x46f   :  { %1334 = vmatprep.subr.mxu0 %v3438_v50  ;;  %2368 = vmatprep.subr.mxu1 %v3798_v0 }
 0x470   :  { %1335 = vmatpush1.msra.mxu0 %v3442_v49  ;;  %2369 = vmatpush3.msra.mxu1 %v2965_v33  ;;  %v3462_v33 = vld [vmem:[#allocation9 + $0x80] sm:$0xff] }
 0x471   :  { %1336 = vmatprep.subr.mxu0 %v3446_v25  ;;  %2370 = vmatprep.subr.mxu1 %v3798_v0 }
 0x472   :  { %1337 = vmatpush1.msra.mxu0 %v3450_v54  ;;  %2371 = vmatpush3.msra.mxu1 %v2971_v34  ;;  %v3470_v34 = vld [vmem:[#allocation9 + $0x68] sm:$0xff] }
 0x473   :  { %1338 = vmatprep.subr.mxu0 %v3454_v32  ;;  %2372 = vmatprep.subr.mxu1 %v3798_v0 }
 0x474   :  { %1339 = vmatpush1.msra.mxu0 %v3458_v57  ;;  %2373 = vmatpush3.msra.mxu1 %v2977_v35  ;;  %v3478_v35 = vld [vmem:[#allocation9 + $0x50] sm:$0xff] }
 0x475   :  { %1340 = vmatprep.subr.mxu0 %v3462_v33  ;;  %2374 = vmatprep.subr.mxu1 %v3798_v0 }
 0x476   :  { %1341 = vmatpush1.msra.mxu0 %v3466_v59  ;;  %2375 = vmatpush3.msra.mxu1 %v2983_v36  ;;  %v3486_v36 = vld [vmem:[#allocation9 + $0x38] sm:$0xff] }
 0x477   :  { %1342 = vmatprep.subr.mxu0 %v3470_v34  ;;  %2376 = vmatprep.subr.mxu1 %v3798_v0 }
 0x478   :  { %1343 = vmatpush1.msra.mxu0 %v3474_v60  ;;  %2377 = vmatpush3.msra.mxu1 %v2989_v37  ;;  %v3494_v37 = vld [vmem:[#allocation9 + $0x20] sm:$0xff] }
 0x479   :  { %1344 = vmatprep.subr.mxu0 %v3478_v35  ;;  %2378 = vmatprep.subr.mxu1 %v3798_v0 }
 0x47a   :  { %1345 = vmatpush1.msra.mxu0 %v3482_v63  ;;  %2379 = vmatpush3.msra.mxu1 %v2995_v38  ;;  %v3502_v38 = vld [vmem:[#allocation9 + $0x8] sm:$0xff] }
 0x47b   :  { %1346 = vmatprep.subr.mxu0 %v3486_v36  ;;  %2380 = vmatprep.subr.mxu1 %v3798_v0  ;;  %3827 = vst [vmem:[#allocation23_spill] sm:$0xff] %v3502_v38 }
 0x47c   :  { %1347 = vmatpush1.msra.mxu0 %v3490_v1  ;;  %2381 = vmatpush3.msra.mxu1 %v3800_v10 }
 0x47d   :  { %1348 = vmatprep.subr.mxu0 %v3494_v37  ;;  %2382 = vmatprep.subr.mxu1 %v3798_v0 }
 0x47e   :  { %1349 = vmatpush1.msra.mxu0 %v3498_v2  ;;  %2383 = vmatpush3.msra.mxu1 %v3813_v47 }
 0x47f   :  { %1350 = vmatprep.subr.mxu0 %v3502_v38  ;;  %2384 = vmatprep.subr.mxu1 %v3798_v0 }
 0x480   :  { %1351 = vmatpush1.msra.mxu0 %v3506_v3  ;;  %1384 = vmatprep.mubr.f32.mxu0 %v3798_v0 }
 0x481   :  { %2385 = vmatpush3.msra.mxu1 %v3816_v52  ;;  %2386 = vmatprep.mubr.msk.f32.mxu1 %vm2750_vm0, %v3798_v0  ;;  %v3830_v52 = vld [vmem:[#allocation33_spill] sm:$0xff] }
 0x482   :  { %1488 = vmatprep.subr.mxu0 %v3369_v53  ;;  %2389 = vmatprep.subr.mxu1 %v3798_v0 }
 0x521   :  { %v1218_v10 = vpop.f32.mrf.mxu0  ;;  %v1289_v47 = vpop.f32.mrf.mxu1 }
 0x522   :  { %v1219_v6 = vadd.f32 %v1218_v10, %v3822_v58  ;;  %v1290_v28 = vadd.f32 %v1289_v47, %v3131_v56  ;;  %v3557_v47 = vld [vmem:[#allocation9 + $0xd0] sm:$0xff] }
 0x523   :  { %v1220_v7 = vpop.f32.mrf.mxu0  ;;  %v2353_v8 = vpop.f32.mrf.mxu1 }
 0x524   :  { %v1293_v12 = vadd.f32 %v1219_v6, %v3829_v9  ;;  %v1221_v14 = vadd.f32 %v1220_v7, %v3116_v23 }
 0x526   :  { %v1949_v13 = vmul.f32 -1.442695, %v1293_v12  ;;  %v1300_v15 = vadd.f32 %v1221_v14, %v3830_v52  ;;  %v3569_v14 = vld [vmem:[#allocation9 + $0xa0] sm:$0xff]  ;;  %v3575_v52 = vld [vmem:[#allocation9 + $0x88] sm:$0xff] }
 0x528   :  { %2545 = vpow2.f32 %v1949_v13  ;;  %v1950_v17 = vmul.f32 -1.442695, %v1300_v15  ;;  %v3563_v13 = vld [vmem:[#allocation9 + $0xb8] sm:$0xff]  ;;  %v3581_v15 = vld [vmem:[#allocation9 + $0x70] sm:$0xff] }
 0x52a   :  { %2547 = vpow2.f32 %v1950_v17  ;;  %v3587_v17 = vld [vmem:[#allocation9 + $0x58] sm:$0xff] }
 0x535   :  { %v2546_v18 = vpop.eup %2545 }
 0x536   :  { %v1297_v19 = vadd.f32 1.0, %v2546_v18  ;;  %v3593_v18 = vld [vmem:[#allocation9 + $0x40] sm:$0xff] }
 0x537   :  { %v2548_v21 = vpop.eup %2547 }
 0x538   :  { %2549 = vrcp.f32 %v1297_v19  ;;  %v1304_v27 = vadd.f32 1.0, %v2548_v21  ;;  %v3599_v19 = vld [vmem:[#allocation9 + $0x28] sm:$0xff]  ;;  %v3606_v21 = vld [vmem:[#allocation9 + $0x10] sm:$0xff] }
 0x539   :  { %3832 = vst [vmem:[#allocation26_spill] sm:$0xff] %v3599_v19  ;;  %3833 = vst [vmem:[#allocation27_spill] sm:$0xff] %v3606_v21 }
 0x53a   :  { %2551 = vrcp.f32 %v1304_v27 }
 0x545   :  { %v2550_v29 = vpop.eup %2549 }
 0x546   :  { %v1307_v30 = vmul.f32 %v2550_v29, %v1290_v28 }
 0x547   :  { %v2552_v10 = vpop.eup %2551 }
 0x548   :  { %v1308_v41 = vadd.f32 %v1307_v30, %v3831_v31  ;;  %v1310_v6 = vsub.f32 1.0, %v2552_v10  ;;  %v1312_v9 = vmul.f32 %v2552_v10, %v3380_v16  ;;  %v3551_v16 = vld [vmem:[#allocation9 + $0xe8] sm:$0xff] }
 0x54a   :  { %2553 = vtanh.f32 %v1308_v41  ;;  %v3834_v41 = vld [vmem:[#allocation34_spill] sm:$0xff] }
 0x557   :  { %v2554_v7 = vpop.eup %2553 }
 0x558   :  { %v1311_v8 = vmul.f32 %v2554_v7, %v1310_v6 }
 0x55a   :  { %v3522_v12 = vadd.f32 %v1312_v9, %v1311_v8  ;;  %v3835_v8 = vld [vmem:[#allocation35_spill] sm:$0xff] }
 0x55c   :  { %1385 = vmatmul.mubr.f32.vlgmr.msra.gmra.mxu0 %v3522_v12  ;;  %2387 = vmatmul.mubr.f32.vlgmr.msra.gmra.mxu1 %v3522_v12 }
 0x55d   :  { %1489 = vmatpush1.msra.mxu0 %v3294_v45  ;;  %2390 = vmatpush3.msra.mxu1 %v3385_v46 }
 0x55e   :  { %1490 = vmatprep.subr.mxu0 %v3298_v40  ;;  %2391 = vmatprep.subr.mxu1 %v3798_v0 }
 0x55f   :  { %1491 = vmatpush1.msra.mxu0 %v3302_v26  ;;  %2392 = vmatpush3.msra.mxu1 %v3391_v48 }
 0x560   :  { %1492 = vmatprep.subr.mxu0 %v3306_v24  ;;  %2393 = vmatprep.subr.mxu1 %v3798_v0 }
 0x561   :  { %1493 = vmatpush1.msra.mxu0 %v3310_v42  ;;  %2394 = vmatpush3.msra.mxu1 %v3397_v51 }
 0x562   :  { %1494 = vmatprep.subr.mxu0 %v3400_v61  ;;  %2395 = vmatprep.subr.mxu1 %v3798_v0 }
 0x563   :  { %1495 = vmatpush1.msra.mxu0 %v3404_v20  ;;  %2396 = vmatpush3.msra.mxu1 %v3407_v39 }
 0x564   :  { %1496 = vmatprep.subr.mxu0 %v3410_v11  ;;  %2397 = vmatprep.subr.mxu1 %v3798_v0 }
 0x565   :  { %1497 = vmatpush1.msra.mxu0 %v3414_v55  ;;  %2398 = vmatpush3.msra.mxu1 %v3417_v5 }
 0x566   :  { %1498 = vmatprep.subr.mxu0 %v3420_v43  ;;  %2399 = vmatprep.subr.mxu1 %v3798_v0 }
 0x567   :  { %1499 = vmatpush1.msra.mxu0 %v3424_v62  ;;  %2400 = vmatpush3.msra.mxu1 %v3427_v22 }
 0x568   :  { %1500 = vmatprep.subr.mxu0 %v3430_v4  ;;  %2401 = vmatprep.subr.mxu1 %v3798_v0 }
 0x569   :  { %1501 = vmatpush1.msra.mxu0 %v3434_v44  ;;  %2402 = vmatpush3.msra.mxu1 %v3551_v16 }
 0x56a   :  { %1502 = vmatprep.subr.mxu0 %v3438_v50  ;;  %2403 = vmatprep.subr.mxu1 %v3798_v0 }
 0x56b   :  { %1503 = vmatpush1.msra.mxu0 %v3442_v49  ;;  %2404 = vmatpush3.msra.mxu1 %v3557_v47 }
 0x56c   :  { %1504 = vmatprep.subr.mxu0 %v3446_v25  ;;  %2405 = vmatprep.subr.mxu1 %v3798_v0 }
 0x56d   :  { %1505 = vmatpush1.msra.mxu0 %v3450_v54  ;;  %2406 = vmatpush3.msra.mxu1 %v3563_v13 }
 0x56e   :  { %1506 = vmatprep.subr.mxu0 %v3454_v32  ;;  %2407 = vmatprep.subr.mxu1 %v3798_v0 }
 0x56f   :  { %1507 = vmatpush1.msra.mxu0 %v3458_v57  ;;  %2408 = vmatpush3.msra.mxu1 %v3569_v14 }
 0x570   :  { %1508 = vmatprep.subr.mxu0 %v3462_v33  ;;  %2409 = vmatprep.subr.mxu1 %v3798_v0 }
 0x571   :  { %1509 = vmatpush1.msra.mxu0 %v3466_v59  ;;  %2410 = vmatpush3.msra.mxu1 %v3575_v52 }
 0x572   :  { %1510 = vmatprep.subr.mxu0 %v3470_v34  ;;  %2411 = vmatprep.subr.mxu1 %v3798_v0 }
 0x573   :  { %1511 = vmatpush1.msra.mxu0 %v3474_v60  ;;  %2412 = vmatpush3.msra.mxu1 %v3581_v15 }
 0x574   :  { %1512 = vmatprep.subr.mxu0 %v3478_v35  ;;  %2413 = vmatprep.subr.mxu1 %v3798_v0 }
 0x575   :  { %1513 = vmatpush1.msra.mxu0 %v3482_v63  ;;  %2414 = vmatpush3.msra.mxu1 %v3587_v17 }
 0x576   :  { %1514 = vmatprep.subr.mxu0 %v3486_v36  ;;  %2415 = vmatprep.subr.mxu1 %v3798_v0 }
 0x577   :  { %1515 = vmatpush1.msra.mxu0 %v3490_v1  ;;  %2416 = vmatpush3.msra.mxu1 %v3593_v18 }
 0x578   :  { %1516 = vmatprep.subr.mxu0 %v3494_v37  ;;  %2417 = vmatprep.subr.mxu1 %v3798_v0 }
 0x579   :  { %1517 = vmatpush1.msra.mxu0 %v3498_v2  ;;  %2418 = vmatpush3.msra.mxu1 %v3599_v19 }
 0x57a   :  { %1518 = vmatprep.subr.mxu0 %v3502_v38  ;;  %2419 = vmatprep.subr.mxu1 %v3798_v0 }
 0x57b   :  { %1519 = vmatpush1.msra.mxu0 %v3506_v3  ;;  %1552 = vmatprep.mubr.f32.mxu0 %v3798_v0 }
 0x57c   :  { %2420 = vmatpush3.msra.mxu1 %v3606_v21  ;;  %2421 = vmatprep.mubr.msk.f32.mxu1 %vm2750_vm0, %v3798_v0 }
 0x57d   :  { %1656 = vmatprep.subr.mxu0 %v3369_v53  ;;  %2424 = vmatprep.subr.mxu1 %v3798_v0 }
 0x61c   :  { %v1386_v27 = vpop.f32.mrf.mxu0  ;;  %v1457_v28 = vpop.f32.mrf.mxu1 }
 0x61d   :  { %v1387_v29 = vadd.f32 %v1386_v27, %v3822_v58  ;;  %v1458_v2 = vadd.f32 %v1457_v28, %v3131_v56  ;;  %v1823_v28 = vld [vmem:[#allocation10] sm:$0xff] }
 0x61e   :  { %v1388_v30 = vpop.f32.mrf.mxu0  ;;  %v2388_v31 = vpop.f32.mrf.mxu1 }
 0x61f   :  { %v1461_v10 = vadd.f32 %v1387_v29, %v3834_v41  ;;  %v1389_v7 = vadd.f32 %v1388_v30, %v3116_v23  ;;  %v3836_v31 = vld [vmem:[#allocation44_spill] sm:$0xff] }
 0x621   :  { %v1951_v6 = vmul.f32 -1.442695, %v1461_v10  ;;  %v1468_v9 = vadd.f32 %v1389_v7, %v3835_v8 }
 0x623   :  { %2555 = vpow2.f32 %v1951_v6  ;;  %v1952_v21 = vmul.f32 -1.442695, %v1468_v9 }
 0x625   :  { %2557 = vpow2.f32 %v1952_v21 }
 0x630   :  { %v2556_v3 = vpop.eup %2555 }
 0x631   :  { %v1465_v53 = vadd.f32 1.0, %v2556_v3  ;;  %v1834_v3 = vld [vmem:[#allocation10 + $0x58] sm:$0xff] }
 0x632   :  { %v2558_v38 = vpop.eup %2557 }
 0x633   :  { %2559 = vrcp.f32 %v1465_v53  ;;  %v1472_v19 = vadd.f32 1.0, %v2558_v38  ;;  %v1835_v38 = vld [vmem:[#allocation10 + $0x60] sm:$0xff] }
 0x635   :  { %2561 = vrcp.f32 %v1472_v19  ;;  %v1824_v19 = vld [vmem:[#allocation10 + $0x8] sm:$0xff] }
 0x640   :  { %v2560_v27 = vpop.eup %2559 }
 0x641   :  { %v1475_v58 = vmul.f32 %v2560_v27, %v1458_v2  ;;  %v1836_v2 = vld [vmem:[#allocation10 + $0x68] sm:$0xff] }
 0x642   :  { %v2562_v41 = vpop.eup %2561 }
 0x643   :  { %v1476_v29 = vadd.f32 %v1475_v58, %v3836_v31  ;;  %v1478_v30 = vsub.f32 1.0, %v2562_v41  ;;  %v1480_v7 = vmul.f32 %v2562_v41, %v3522_v12  ;;  %v1833_v12 = vld [vmem:[#allocation10 + $0x50] sm:$0xff] }
 0x645   :  { %2563 = vtanh.f32 %v1476_v29  ;;  %v3846_v29 = vld [vmem:[#allocation39_spill] sm:$0xff] }
 0x652   :  { %v2564_v10 = vpop.eup %2563 }
 0x653   :  { %v1479_v6 = vmul.f32 %v2564_v10, %v1478_v30 }
 0x655   :  { %v3620_v21 = vadd.f32 %v1480_v7, %v1479_v6  ;;  %v3847_v6 = vld [vmem:[#allocation41_spill] sm:$0xff] }
 0x657   :  { %1553 = vmatmul.mubr.f32.vlgmr.msra.gmra.mxu0 %v3620_v21  ;;  %2422 = vmatmul.mubr.f32.vlgmr.msra.gmra.mxu1 %v3620_v21 }
 0x658   :  { %1657 = vmatpush1.msra.mxu0 %v3294_v45  ;;  %2425 = vmatpush3.msra.mxu1 %v3385_v46  ;;  %v3837_v45 = vld [vmem:[#allocation18_spill] sm:$0xff] }
 0x659   :  { %1658 = vmatprep.subr.mxu0 %v3298_v40  ;;  %2426 = vmatprep.subr.mxu1 %v3798_v0  ;;  %v3838_v40 = vld [vmem:[#allocation26_spill] sm:$0xff] }
 0x65a   :  { %1659 = vmatpush1.msra.mxu0 %v3302_v26  ;;  %2427 = vmatpush3.msra.mxu1 %v3391_v48  ;;  %v3839_v26 = vld [vmem:[#allocation23_spill] sm:$0xff]  ;;  %v3842_v48 = vld [vmem:[#allocation40_spill] sm:$0xff] }
 0x65b   :  { %1660 = vmatprep.subr.mxu0 %v3306_v24  ;;  %2428 = vmatprep.subr.mxu1 %v3798_v0  ;;  %v3840_v24 = vld [vmem:[#allocation19_spill] sm:$0xff] }
 0x65c   :  { %1661 = vmatpush1.msra.mxu0 %v3310_v42  ;;  %2429 = vmatpush3.msra.mxu1 %v3397_v51  ;;  %v3841_v42 = vld [vmem:[#allocation27_spill] sm:$0xff] }
 0x65d   :  { %1662 = vmatprep.subr.mxu0 %v3400_v61  ;;  %2430 = vmatprep.subr.mxu1 %v3798_v0 }
 0x65e   :  { %1663 = vmatpush1.msra.mxu0 %v3404_v20  ;;  %2431 = vmatpush3.msra.mxu1 %v3407_v39  ;;  %v3843_v39 = vld [vmem:[#allocation36_spill] sm:$0xff] }
 0x65f   :  { %1664 = vmatprep.subr.mxu0 %v3410_v11  ;;  %2432 = vmatprep.subr.mxu1 %v3798_v0 }
 0x660   :  { %1665 = vmatpush1.msra.mxu0 %v3414_v55  ;;  %2433 = vmatpush3.msra.mxu1 %v3417_v5 }
 0x661   :  { %1666 = vmatprep.subr.mxu0 %v3420_v43  ;;  %2434 = vmatprep.subr.mxu1 %v3798_v0  ;;  %v3844_v43 = vld [vmem:[#allocation37_spill] sm:$0xff] }
 0x662   :  { %1667 = vmatpush1.msra.mxu0 %v3424_v62  ;;  %2435 = vmatpush3.msra.mxu1 %v3427_v22 }
 0x663   :  { %1668 = vmatprep.subr.mxu0 %v3430_v4  ;;  %2436 = vmatprep.subr.mxu1 %v3798_v0 }
 0x664   :  { %1669 = vmatpush1.msra.mxu0 %v3434_v44  ;;  %2437 = vmatpush3.msra.mxu1 %v3551_v16  ;;  %v1832_v16 = vld [vmem:[#allocation10 + $0x48] sm:$0xff] }
 0x665   :  { %1670 = vmatprep.subr.mxu0 %v3438_v50  ;;  %2438 = vmatprep.subr.mxu1 %v3798_v0 }
 0x666   :  { %1671 = vmatpush1.msra.mxu0 %v3442_v49  ;;  %2439 = vmatpush3.msra.mxu1 %v3557_v47  ;;  %v1831_v47 = vld [vmem:[#allocation10 + $0x40] sm:$0xff] }
 0x667   :  { %1672 = vmatprep.subr.mxu0 %v3446_v25  ;;  %2440 = vmatprep.subr.mxu1 %v3798_v0 }
 0x668   :  { %1673 = vmatpush1.msra.mxu0 %v3450_v54  ;;  %2441 = vmatpush3.msra.mxu1 %v3563_v13  ;;  %v1830_v13 = vld [vmem:[#allocation10 + $0x38] sm:$0xff] }
 0x669   :  { %1674 = vmatprep.subr.mxu0 %v3454_v32  ;;  %2442 = vmatprep.subr.mxu1 %v3798_v0 }
 0x66a   :  { %1675 = vmatpush1.msra.mxu0 %v3458_v57  ;;  %2443 = vmatpush3.msra.mxu1 %v3569_v14  ;;  %v3845_v57 = vld [vmem:[#allocation47_spill] sm:$0xff]  ;;  %v1829_v14 = vld [vmem:[#allocation10 + $0x30] sm:$0xff] }
 0x66b   :  { %1676 = vmatprep.subr.mxu0 %v3462_v33  ;;  %2444 = vmatprep.subr.mxu1 %v3798_v0 }
 0x66c   :  { %1677 = vmatpush1.msra.mxu0 %v3466_v59  ;;  %2445 = vmatpush3.msra.mxu1 %v3575_v52  ;;  %v1828_v52 = vld [vmem:[#allocation10 + $0x28] sm:$0xff] }
 0x66d   :  { %1678 = vmatprep.subr.mxu0 %v3470_v34  ;;  %2446 = vmatprep.subr.mxu1 %v3798_v0 }
 0x66e   :  { %1679 = vmatpush1.msra.mxu0 %v3474_v60  ;;  %2447 = vmatpush3.msra.mxu1 %v3581_v15  ;;  %v1827_v15 = vld [vmem:[#allocation10 + $0x20] sm:$0xff] }
 0x66f   :  { %1680 = vmatprep.subr.mxu0 %v3478_v35  ;;  %2448 = vmatprep.subr.mxu1 %v3798_v0 }
 0x670   :  { %1681 = vmatpush1.msra.mxu0 %v3482_v63  ;;  %2449 = vmatpush3.msra.mxu1 %v3587_v17  ;;  %v1826_v17 = vld [vmem:[#allocation10 + $0x18] sm:$0xff] }
 0x671   :  { %1682 = vmatprep.subr.mxu0 %v3486_v36  ;;  %2450 = vmatprep.subr.mxu1 %v3798_v0 }
 0x672   :  { %1683 = vmatpush1.msra.mxu0 %v3490_v1  ;;  %2451 = vmatpush3.msra.mxu1 %v3593_v18  ;;  %v1838_v1 = vld [vmem:[#allocation10 + $0x78] sm:$0xff]  ;;  %v1825_v18 = vld [vmem:[#allocation10 + $0x10] sm:$0xff] }
 0x673   :  { %1684 = vmatprep.subr.mxu0 %v3494_v37  ;;  %2452 = vmatprep.subr.mxu1 %v3798_v0  ;;  %v1837_v37 = vld [vmem:[#allocation10 + $0x70] sm:$0xff] }
 0x674   :  { %1685 = vmatpush1.msra.mxu0 %v3837_v45  ;;  %2453 = vmatpush3.msra.mxu1 %v3838_v40 }
 0x675   :  { %1686 = vmatprep.subr.mxu0 %v3839_v26  ;;  %2454 = vmatprep.subr.mxu1 %v3798_v0 }
 0x676   :  { %1687 = vmatpush1.msra.mxu0 %v3840_v24  ;;  %1720 = vmatprep.mubr.f32.mxu0 %v3798_v0 }
 0x677   :  { %2455 = vmatpush3.msra.mxu1 %v3841_v42  ;;  %2456 = vmatprep.mubr.msk.f32.mxu1 %vm2750_vm0, %v3798_v0 }
 0x678   :  { %2459 = vmatprep.subr.mxu0 %v3798_v0 }
 0x717   :  { %v1554_v58 = vpop.f32.mrf.mxu0  ;;  %v1625_v46 = vpop.f32.mrf.mxu1 }
 0x718   :  { %v1555_v51 = vadd.f32 %v1554_v58, %v3842_v48  ;;  %v1626_v25 = vadd.f32 %v1625_v46, %v3131_v56  ;;  %v3848_v46 = vld [vmem:[#allocation46_spill] sm:$0xff] }
 0x719   :  { %v1556_v61 = vpop.f32.mrf.mxu0  ;;  %v2423_v20 = vpop.f32.mrf.mxu1 }
 0x71a   :  { %v1629_v11 = vadd.f32 %v1555_v51, %v3843_v39  ;;  %v1557_v5 = vadd.f32 %v1556_v61, %v3116_v23 }
 0x71c   :  { %v1953_v55 = vmul.f32 -1.442695, %v1629_v11  ;;  %v1636_v62 = vadd.f32 %v1557_v5, %v3844_v43 }
 0x71e   :  { %2565 = vpow2.f32 %v1953_v55  ;;  %v1954_v22 = vmul.f32 -1.442695, %v1636_v62  ;;  %v1957_v55 = vld [vmem:[%s3737_s6] ss:$0 sm:$0xff] }
 0x720   :  { %2567 = vpow2.f32 %v1954_v22 }
 0x72b   :  { %v2566_v4 = vpop.eup %2565 }
 0x72c   :  { %v1633_v44 = vadd.f32 1.0, %v2566_v4 }
 0x72d   :  { %v2568_v50 = vpop.eup %2567 }
 0x72e   :  { %2569 = vrcp.f32 %v1633_v44  ;;  %v1640_v49 = vadd.f32 1.0, %v2568_v50 }
 0x730   :  { %2571 = vrcp.f32 %v1640_v49 }
 0x73b   :  { %v2570_v54 = vpop.eup %2569 }
 0x73c   :  { %v1643_v32 = vmul.f32 %v2570_v54, %v1626_v25 }
 0x73d   :  { %v2572_v59 = vpop.eup %2571 }
 0x73e   :  { %v1644_v33 = vadd.f32 %v1643_v32, %v3845_v57  ;;  %v1646_v34 = vsub.f32 1.0, %v2572_v59  ;;  %v1648_v63 = vmul.f32 %v2572_v59, %v3620_v21 }
 0x740   :  { %2573 = vtanh.f32 %v1644_v33 }
 0x74d   :  { %v2574_v60 = vpop.eup %2573 }
 0x74e   :  { %v1647_v35 = vmul.f32 %v2574_v60, %v1646_v34 }
 0x750   :  { %v3697_v36 = vadd.f32 %v1648_v63, %v1647_v35 }
 0x752   :  { %1721 = vmatmul.mubr.f32.vlgmr.msra.gmra.mxu0 %v3697_v36  ;;  %2457 = vmatmul.mubr.f32.vlgmr.msra.gmra.mxu1 %v3697_v36 }
 0x753   :  { %2491 = vmatprep.mubr.msk.f32.mxu0 %vm2750_vm0, %v3798_v0  ;;  %2460 = vmatpush3.msra.mxu0 %v1838_v1 }
 0x754   :  { %2461 = vmatprep.subr.mxu0 %v3798_v0 }
 0x755   :  { %2462 = vmatpush3.msra.mxu0 %v1837_v37 }
 0x756   :  { %2463 = vmatprep.subr.mxu0 %v3798_v0 }
 0x757   :  { %2464 = vmatpush3.msra.mxu0 %v1836_v2 }
 0x758   :  { %2465 = vmatprep.subr.mxu0 %v3798_v0 }
 0x759   :  { %2466 = vmatpush3.msra.mxu0 %v1835_v38 }
 0x75a   :  { %2467 = vmatprep.subr.mxu0 %v3798_v0 }
 0x75b   :  { %2468 = vmatpush3.msra.mxu0 %v1834_v3 }
 0x75c   :  { %2469 = vmatprep.subr.mxu0 %v3798_v0 }
 0x75d   :  { %2470 = vmatpush3.msra.mxu0 %v1833_v12 }
 0x75e   :  { %2471 = vmatprep.subr.mxu0 %v3798_v0 }
 0x75f   :  { %2472 = vmatpush3.msra.mxu0 %v1832_v16 }
 0x760   :  { %2473 = vmatprep.subr.mxu0 %v3798_v0 }
 0x761   :  { %2474 = vmatpush3.msra.mxu0 %v1831_v47 }
 0x762   :  { %2475 = vmatprep.subr.mxu0 %v3798_v0 }
 0x763   :  { %2476 = vmatpush3.msra.mxu0 %v1830_v13 }
 0x764   :  { %2477 = vmatprep.subr.mxu0 %v3798_v0 }
 0x765   :  { %2478 = vmatpush3.msra.mxu0 %v1829_v14 }
 0x766   :  { %2479 = vmatprep.subr.mxu0 %v3798_v0 }
 0x767   :  { %2480 = vmatpush3.msra.mxu0 %v1828_v52 }
 0x768   :  { %2481 = vmatprep.subr.mxu0 %v3798_v0 }
 0x769   :  { %2482 = vmatpush3.msra.mxu0 %v1827_v15 }
 0x76a   :  { %2483 = vmatprep.subr.mxu0 %v3798_v0 }
 0x76b   :  { %2484 = vmatpush3.msra.mxu0 %v1826_v17 }
 0x76c   :  { %2485 = vmatprep.subr.mxu0 %v3798_v0 }
 0x76d   :  { %2486 = vmatpush3.msra.mxu0 %v1825_v18 }
 0x76e   :  { %2487 = vmatprep.subr.mxu0 %v3798_v0 }
 0x76f   :  { %2488 = vmatpush3.msra.mxu0 %v1824_v19 }
 0x770   :  { %2489 = vmatprep.subr.mxu0 %v3798_v0 }
 0x771   :  { %2490 = vmatpush3.msra.mxu0 %v1823_v28 }
 0x812   :  { %v1722_v8 = vpop.f32.mrf.mxu0  ;;  %v1793_v9 = vpop.f32.mrf.mxu1 }
 0x813   :  { %v1723_v53 = vadd.f32 %v1722_v8, %v3842_v48  ;;  %v1794_v24 = vadd.f32 %v1793_v9, %v3131_v56 }
 0x814   :  { %v1724_v27 = vpop.f32.mrf.mxu0  ;;  %v2458_v31 = vpop.f32.mrf.mxu1 }
 0x815   :  { %v1797_v41 = vadd.f32 %v1723_v53, %v3846_v29  ;;  %v1725_v10 = vadd.f32 %v1724_v27, %v3116_v23 }
 0x817   :  { %v1955_v30 = vmul.f32 -1.442695, %v1797_v41  ;;  %v1804_v7 = vadd.f32 %v1725_v10, %v3847_v6 }
 0x819   :  { %2575 = vpow2.f32 %v1955_v30  ;;  %v1956_v21 = vmul.f32 -1.442695, %v1804_v7 }
 0x81b   :  { %2577 = vpow2.f32 %v1956_v21 }
 0x826   :  { %v2576_v45 = vpop.eup %2575 }
 0x827   :  { %v1801_v40 = vadd.f32 1.0, %v2576_v45 }
 0x828   :  { %v2578_v0 = vpop.eup %2577 }
 0x829   :  { %2579 = vrcp.f32 %v1801_v40  ;;  %v1808_v26 = vadd.f32 1.0, %v2578_v0 }
 0x82b   :  { %2581 = vrcp.f32 %v1808_v26 }
 0x836   :  { %v2580_v42 = vpop.eup %2579 }
 0x837   :  { %v1811_v58 = vmul.f32 %v2580_v42, %v1794_v24 }
 0x838   :  { %v2582_v51 = vpop.eup %2581 }
 0x839   :  { %v1812_v48 = vadd.f32 %v1811_v58, %v3848_v46  ;;  %v1814_v23 = vsub.f32 1.0, %v2582_v51  ;;  %v1816_v39 = vmul.f32 %v2582_v51, %v3697_v36 }
 0x83b   :  { %2583 = vtanh.f32 %v1812_v48 }
 0x848   :  { %v2584_v61 = vpop.eup %2583 }
 0x849   :  { %v1815_v20 = vmul.f32 %v2584_v61, %v1814_v23 }
 0x84b   :  { %v1817_v11 = vadd.f32 %v1816_v39, %v1815_v20 }
 0x84d   :  { %2492 = vmatmul.mubr.f32.vlgmr.msra.gmra.mxu0 %v1817_v11 }
 0x90d   :  { %v1912_v56 = vpop.f32.mrf.mxu0 }
 0x90e   :  { %v1913_v5 = vadd.f32 %v1957_v55, %v1912_v56 }
 0x90f   :  { %v2493_v43 = vpop.f32.mrf.mxu0 }
 0x910   :  { %1916 = vst [vmem:[#allocation12] sm:$0xff] %v1913_v5 }
 0x911   :  { %2724 = shalt.err (!%p2721_p10)
}
 0x912   :  { %1926 = dma.vmem_to_hbm [thread:$0]  %s1924_s26, 128, %s3738_s7, [#allocation6]  }
 0x913   :  { %2739 = dma.done.wait [#allocation6], 128  }
 0x914   :  { %2740 = vsyncadd [#allocation6], 4294967168 }
 0x915   :  { %1930 = vsyncpa [#allocation5], 1 }
 0x916   :  { %1931 = vsyncpa [#allocation8], 1 }
 0x917   :  { %1932 = vsyncpa [#allocation11], 1 }
 0x918   :  { %1933 = vsyncpa [#allocation6], 1 }

</bundles_post_ra>
